<compile_context>
chip_gen: v7x
topology: tpu7x:2x2x1
jax: 0.10.0
libtpu: 0.0.40
codegen_flags: <defaults>
</compile_context>

<pallas_src>
import jax
import jax.numpy as jnp
import numpy as np
from jax import lax
from jax.experimental import pallas as pl
from jax.experimental.pallas import tpu as pltpu

# ---- small StableLM-like config -------------------------------------------
HIDDEN = 128
N_HEADS = 4
N_KV = 2
HEAD_DIM = HIDDEN // N_HEADS            # 32
PARTIAL_ROTARY = 0.25                   # StableLM "rope_pct"
ROT = int(HEAD_DIM * PARTIAL_ROTARY)    # rotary_dim = 8
HALF = ROT // 2
ROPE_THETA = 10000.0
SEQ = 16
BATCH = 2
Q_SIZE = N_HEADS * HEAD_DIM             # 128
KV_SIZE = N_KV * HEAD_DIM               # 64
QKV_OUT = Q_SIZE + 2 * KV_SIZE          # 256
SCALE = HEAD_DIM ** -0.5
GROUP = N_HEADS // N_KV                 # q-heads per kv-head
GRP_LANES = (GROUP + 2) * HEAD_DIM      # 128 lanes per kv-group block

# Fully batch-fused by default (best on 1-TC v5e/v6e).  Set to 1 (grid=(B,)
# "parallel") to spread batches over the 2 TensorCores of a v7x chip.
BATCHES_PER_BLOCK = BATCH


# ---- Pallas kernel ----------------------------------------------------------
def stablelm_attn_kernel(x_ref, wqkv_ref, cos_ref, sinp_ref, sinn_ref, wo_ref,
                         out_ref, attn_ref):
    S = SEQ
    x = x_ref[...].astype(jnp.bfloat16)                             # [rows, H]

    # fused QKV projection: ONE matmul over every batch in this block
    qkv = jnp.dot(x, wqkv_ref[...],
                  preferred_element_type=jnp.float32)               # [rows, 256]

    # full-slab partial (neox) rope: 2 XLU rolls + 3 mul / 2 add on the VPU.
    # Tables already carry the group-reordered layout, V-lane identity and the
    # attention SCALE on the Q lanes.
    roped = (qkv * cos_ref[...]
             + pltpu.roll(qkv, HALF, axis=1) * sinp_ref[...]
             + pltpu.roll(qkv, QKV_OUT - HALF, axis=1) * sinn_ref[...])

    # causal mask for the GROUP-stacked scores (no [S,S] bias materialization)
    row = lax.broadcasted_iota(jnp.int32, (GROUP * S, S), 0)
    col = lax.broadcasted_iota(jnp.int32, (GROUP * S, S), 1)
    causal = col <= (row & (S - 1))                 # S is a power of two

    # per (batch, kv-group) attention; GROUP q-heads stacked along sublanes so
    # QK^T and PV are one fat matmul each per group.
    # TODO(synk): with many heads/batches switch these static Python loops to
    #             lax.fori_loop(..., unroll=True) to bound vreg live ranges.
    for b in range(BATCHES_PER_BLOCK):
        blk_rows = roped[b * S:(b + 1) * S, :]                      # [S, 256]
        for g in range(N_KV):
            # aligned whole-vreg slice holding [q_h0 | q_h1 | k | v] for group g
            grp = blk_rows[:, g * GRP_LANES:(g + 1) * GRP_LANES]    # [S, 128]

            q_stk = jnp.concatenate(
                [grp[:, j * HEAD_DIM:(j + 1) * HEAD_DIM] for j in range(GROUP)],
                axis=0).astype(jnp.bfloat16)                        # [GROUP*S, D]
            k_g = grp[:, GROUP * HEAD_DIM:
                      (GROUP + 1) * HEAD_DIM].astype(jnp.bfloat16)  # [S, D]
            v_g = grp[:, (GROUP + 1) * HEAD_DIM:
                      (GROUP + 2) * HEAD_DIM].astype(jnp.bfloat16)  # [S, D]

            # scores: contract head_dim of q with head_dim of k (no explicit .T)
            s = lax.dot_general(q_stk, k_g, (((1,), (1,)), ((), ())),
                                preferred_element_type=jnp.float32)  # [GROUP*S, S]
            # causal diagonal is always unmasked -> row max stays finite.
            s = jnp.where(causal, s, -1e30)
            s = s - jnp.max(s, axis=-1, keepdims=True)
            p = jnp.exp(s)
            p = p * pl.reciprocal(jnp.sum(p, axis=-1, keepdims=True), approx=True)

            # PV for the whole group in one matmul
            o_stk = jnp.dot(p.astype(jnp.bfloat16), v_g,
                            preferred_element_type=jnp.float32)      # [GROUP*S, D]

            # scatter per-head outputs lane-dense into the o_proj input scratch
            for j in range(GROUP):
                h = g * GROUP + j
                attn_ref[b * S:(b + 1) * S,
                         h * HEAD_DIM:(h + 1) * HEAD_DIM] = o_stk[j * S:(j + 1) * S, :]

    # single K=128 o_proj matmul over the whole block
    out_ref[...] = jnp.dot(attn_ref[...].astype(jnp.bfloat16), wo_ref[...],
                           preferred_element_type=jnp.float32)


# ---- rope tables (wrapper-side, parameter-like glue) ------------------------
def _rope_tables(positions):
    """Full-width [B*S, QKV_OUT] cos / +sin / -sin tables in the group-reordered
    lane layout [q_h0|q_h1|k|v] per kv-group.  SCALE folded into the Q lanes,
    V lanes are identity (cos=1, sin=0).  Positions are shared across batches,
    matching the reference."""
    S = positions.shape[0]
    pos = positions.astype(jnp.float32)
    inv_freq = 1.0 / (ROPE_THETA ** (jnp.arange(0, ROT, 2, dtype=jnp.float32) / ROT))
    ang = pos[:, None] * inv_freq[None, :]                          # [S, HALF]
    cos, sin = jnp.cos(ang), jnp.sin(ang)
    ones_tail = jnp.ones((S, HEAD_DIM - ROT), jnp.float32)
    zeros_tail = jnp.zeros((S, HEAD_DIM - ROT), jnp.float32)
    zeros_half = jnp.zeros((S, HALF), jnp.float32)
    ones_head = jnp.ones((S, HEAD_DIM), jnp.float32)
    zeros_head = jnp.zeros((S, HEAD_DIM), jnp.float32)

    # per-head patterns, padded to HEAD_DIM (pass-through: cos=1, sin=0)
    cos_h = jnp.concatenate([cos, cos, ones_tail], axis=-1)         # [S, D]
    sinp_h = jnp.concatenate([zeros_half, sin, zeros_tail], axis=-1)
    sinn_h = jnp.concatenate([-sin, zeros_half, zeros_tail], axis=-1)

    # one kv-group block: [q_h0 | q_h1 | k | v]  (Q carries SCALE, V identity)
    cos_g = jnp.concatenate([jnp.tile(cos_h * SCALE, (1, GROUP)), cos_h, ones_head], -1)
    sinp_g = jnp.concatenate([jnp.tile(sinp_h * SCALE, (1, GROUP)), sinp_h, zeros_head], -1)
    sinn_g = jnp.concatenate([jnp.tile(sinn_h * SCALE, (1, GROUP)), sinn_h, zeros_head], -1)

    # tile over kv-groups (lanes) and over batches (rows of the flattened slab)
    cos_t = jnp.tile(cos_g, (BATCH, N_KV))
    sinp_t = jnp.tile(sinp_g, (BATCH, N_KV))
    sinn_t = jnp.tile(sinn_g, (BATCH, N_KV))
    return cos_t, sinp_t, sinn_t                                    # each [B*S, 256]


def _qkv_column_perm():
    """Column permutation turning the module's [q_h0..q_h3 | k_0 k_1 | v_0 v_1]
    layout into the per-kv-group layout [q_h0 q_h1 k_0 v_0 | q_h2 q_h3 k_1 v_1]."""
    cols = []
    for g in range(N_KV):
        for j in range(GROUP):
            h = g * GROUP + j
            cols.append(np.arange(h * HEAD_DIM, (h + 1) * HEAD_DIM))
        cols.append(np.arange(Q_SIZE + g * HEAD_DIM, Q_SIZE + (g + 1) * HEAD_DIM))
        cols.append(np.arange(Q_SIZE + KV_SIZE + g * HEAD_DIM,
                              Q_SIZE + KV_SIZE + (g + 1) * HEAD_DIM))
    return np.concatenate(cols)


# ---- wrapper ----------------------------------------------------------------
def stablelm_attention(positions, hidden_states, w_qkv, w_o):
    """positions: [S] int32; hidden_states: [B, S, H] f32; weights f32 (stored bf16)."""
    B, S, H = hidden_states.shape
    assert S & (S - 1) == 0, "kernel causal mask uses row & (S-1)"
    assert B % BATCHES_PER_BLOCK == 0

    cos_t, sinp_t, sinn_t = _rope_tables(positions)
    w_qkv_bf = w_qkv[:, _qkv_column_perm()].astype(jnp.bfloat16)  # reorder + bf16 storage
    w_o_bf = w_o.astype(jnp.bfloat16)
    x_flat = hidden_states.reshape(B * S, H)                      # contiguous, free

    n_blocks = B // BATCHES_PER_BLOCK
    rows = BATCHES_PER_BLOCK * S

    grid_spec = pltpu.PrefetchScalarGridSpec(
        num_scalar_prefetch=0,
        grid=(n_blocks,),
        in_specs=[
            pl.BlockSpec((rows, H), lambda i: (i, 0)),             # hidden_states (flat)
            pl.BlockSpec((H, QKV_OUT), lambda i: (0, 0)),          # w_qkv (bf16, reordered)
            pl.BlockSpec((rows, QKV_OUT), lambda i: (i, 0)),       # cos table
            pl.BlockSpec((rows, QKV_OUT), lambda i: (i, 0)),       # +sin table
            pl.BlockSpec((rows, QKV_OUT), lambda i: (i, 0)),       # -sin table
            pl.BlockSpec((Q_SIZE, H), lambda i: (0, 0)),           # w_o (bf16)
        ],
        out_specs=pl.BlockSpec((rows, H), lambda i: (i, 0)),
        scratch_shapes=[pltpu.VMEM((rows, Q_SIZE), jnp.float32)],  # lane-dense attn out
    )
    out_flat = pl.pallas_call(
        stablelm_attn_kernel,
        out_shape=jax.ShapeDtypeStruct((B * S, H), jnp.float32),
        grid_spec=grid_spec,
        compiler_params=pltpu.CompilerParams(
            dimension_semantics=("parallel",)),
    )(x_flat, w_qkv_bf, cos_t, sinp_t, sinn_t, w_o_bf)
    return out_flat.reshape(B, S, H)


# ---- pure-JAX reference (module semantics, f32) -----------------------------
def reference(positions, hidden_states, w_qkv, w_o):
    def one_seq(x):
        S = x.shape[0]
        qkv = x @ w_qkv
        q = qkv[:, :Q_SIZE].reshape(S, N_HEADS, HEAD_DIM)
        k = qkv[:, Q_SIZE:Q_SIZE + KV_SIZE].reshape(S, N_KV, HEAD_DIM)
        v = qkv[:, Q_SIZE + KV_SIZE:].reshape(S, N_KV, HEAD_DIM)
        inv_freq = 1.0 / (ROPE_THETA ** (jnp.arange(0, ROT, 2, dtype=jnp.float32) / ROT))
        ang = positions.astype(jnp.float32)[:, None] * inv_freq[None, :]
        cos = jnp.cos(ang)[:, None, :]
        sin = jnp.sin(ang)[:, None, :]

        def rope(t):
            t1, t2, rest = t[..., :HALF], t[..., HALF:ROT], t[..., ROT:]
            return jnp.concatenate([t1 * cos - t2 * sin, t2 * cos + t1 * sin, rest], -1)

        q, k = rope(q), rope(k)
        k = jnp.repeat(k, GROUP, axis=1)
        v = jnp.repeat(v, GROUP, axis=1)
        s = jnp.einsum('qhd,khd->hqk', q, k) * SCALE
        mask = jnp.tril(jnp.ones((S, S), dtype=bool))
        s = jnp.where(mask[None], s, -1e30)
        p = jax.nn.softmax(s, axis=-1)
        o = jnp.einsum('hqk,khd->qhd', p, v).reshape(S, N_HEADS * HEAD_DIM)
        return o @ w_o

    return jax.vmap(one_seq)(hidden_states)


# ---- main -------------------------------------------------------------------
if __name__ == "__main__":
    key = jax.random.PRNGKey(0)
    k1, k2, k3 = jax.random.split(key, 3)

    hidden_states = jax.random.normal(k1, (BATCH, SEQ, HIDDEN), dtype=jnp.float32)
    # qkv_proj: [in=H, out=q_size + 2*kv_size]; use_qkv_bias defaults to False.
    w_qkv = jax.random.normal(k2, (HIDDEN, QKV_OUT), jnp.float32) * 0.05
    # o_proj: [in=nH*D, out=H], bias=False.
    w_o = jax.random.normal(k3, (Q_SIZE, HIDDEN), jnp.float32) * 0.05
    positions = jnp.arange(SEQ, dtype=jnp.int32)

    out = stablelm_attention(positions, hidden_states, w_qkv, w_o)
    out = jax.block_until_ready(out)

    ref = reference(positions, hidden_states, w_qkv, w_o)
    # Tolerance accounts for bf16 MXU operands (f32 accumulation / f32 softmax).
    np.testing.assert_allclose(np.asarray(out), np.asarray(ref), rtol=3e-2, atol=3e-2)

    print("KERNEL_OK")
</pallas_src>

<mosaic_0001>
module attributes {stable_mosaic.version = 11 : i64} {
  func.func @stablelm_attn_kernel(%arg0: i32, %arg1: memref<32x128xf32, #tpu.memory_space<vmem>>, %arg2: memref<128x256xbf16, #tpu.memory_space<vmem>>, %arg3: memref<32x256xf32, #tpu.memory_space<vmem>>, %arg4: memref<32x256xf32, #tpu.memory_space<vmem>>, %arg5: memref<32x256xf32, #tpu.memory_space<vmem>>, %arg6: memref<128x128xbf16, #tpu.memory_space<vmem>>, %arg7: memref<32x128xf32, #tpu.memory_space<vmem>>, %arg8: memref<32x128xf32, #tpu.memory_space<vmem>>) attributes {dimension_semantics = [#tpu.dimension_semantics<parallel>], iteration_bounds = array<i64: 1>, scalar_prefetch = 0 : i64, scratch_operands = 1 : i64, tpu.core_type = #tpu.core_type<tc>, window_params = [{transform_indices = @transform_0, window_bounds = array<i64: 32, 128>}, {pipeline_mode = #tpu.pipeline_mode<synchronous>, transform_indices = @transform_1, window_bounds = array<i64: 128, 256>}, {transform_indices = @transform_2, window_bounds = array<i64: 32, 256>}, {transform_indices = @transform_3, window_bounds = array<i64: 32, 256>}, {transform_indices = @transform_4, window_bounds = array<i64: 32, 256>}, {pipeline_mode = #tpu.pipeline_mode<synchronous>, transform_indices = @transform_5, window_bounds = array<i64: 128, 128>}, {transform_indices = @transform_6, window_bounds = array<i64: 32, 128>}]} {
    %c0 = arith.constant 0 : index
    %c0_0 = arith.constant 0 : index
    %0 = vector.load %arg1[%c0, %c0_0] : memref<32x128xf32, #tpu.memory_space<vmem>>, vector<32x128xf32>
    %1 = arith.truncf %0 : vector<32x128xf32> to vector<32x128xbf16>
    %c0_1 = arith.constant 0 : index
    %c0_2 = arith.constant 0 : index
    %2 = vector.load %arg2[%c0_1, %c0_2] : memref<128x256xbf16, #tpu.memory_space<vmem>>, vector<128x256xbf16>
    %cst = arith.constant dense<0.000000e+00> : vector<32x256xf32>
    %3 = tpu.matmul %1, %2, %cst {dimension_numbers = #tpu.dot_dimension_numbers<[1], [0], [0], [1], [0, 0, 1, 1], [], []>} : vector<32x128xbf16>, vector<128x256xbf16>, vector<32x256xf32> -> vector<32x256xf32>
    %c0_3 = arith.constant 0 : index
    %c0_4 = arith.constant 0 : index
    %4 = vector.load %arg3[%c0_3, %c0_4] : memref<32x256xf32, #tpu.memory_space<vmem>>, vector<32x256xf32>
    %5 = arith.mulf %3, %4 : vector<32x256xf32>
    %c4_i32 = arith.constant 4 : i32
    %6 = tpu.dynamic_rotate %3 by %c4_i32 dim 1 : vector<32x256xf32>, i32 -> vector<32x256xf32>
    %c0_5 = arith.constant 0 : index
    %c0_6 = arith.constant 0 : index
    %7 = vector.load %arg4[%c0_5, %c0_6] : memref<32x256xf32, #tpu.memory_space<vmem>>, vector<32x256xf32>
    %8 = arith.mulf %6, %7 : vector<32x256xf32>
    %9 = arith.addf %5, %8 : vector<32x256xf32>
    %c252_i32 = arith.constant 252 : i32
    %10 = tpu.dynamic_rotate %3 by %c252_i32 dim 1 : vector<32x256xf32>, i32 -> vector<32x256xf32>
    %c0_7 = arith.constant 0 : index
    %c0_8 = arith.constant 0 : index
    %11 = vector.load %arg5[%c0_7, %c0_8] : memref<32x256xf32, #tpu.memory_space<vmem>>, vector<32x256xf32>
    %12 = arith.mulf %10, %11 : vector<32x256xf32>
    %13 = arith.addf %9, %12 : vector<32x256xf32>
    %14 = tpu.iota {dimensions = array<i32: 0>} : vector<32x16xi32>
    %15 = tpu.iota {dimensions = array<i32: 1>} : vector<32x16xi32>
    %c15_i32 = arith.constant 15 : i32
    %16 = vector.broadcast %c15_i32 : i32 to vector<32x16xi32>
    %17 = arith.andi %14, %16 : vector<32x16xi32>
    %18 = arith.cmpi sle, %15, %17 : vector<32x16xi32>
    %19 = vector.extract_strided_slice %13 {offsets = [0, 0], sizes = [16, 256], strides = [1, 1]} : vector<32x256xf32> to vector<16x256xf32>
    %20 = vector.extract_strided_slice %19 {offsets = [0, 0], sizes = [16, 128], strides = [1, 1]} : vector<16x256xf32> to vector<16x128xf32>
    %21 = vector.extract_strided_slice %20 {offsets = [0, 0], sizes = [16, 32], strides = [1, 1]} : vector<16x128xf32> to vector<16x32xf32>
    %22 = vector.extract_strided_slice %20 {offsets = [0, 32], sizes = [16, 32], strides = [1, 1]} : vector<16x128xf32> to vector<16x32xf32>
    %23 = tpu.concatenate %21, %22 in 0 : vector<16x32xf32>, vector<16x32xf32> -> vector<32x32xf32>
    %24 = arith.truncf %23 : vector<32x32xf32> to vector<32x32xbf16>
    %25 = vector.extract_strided_slice %20 {offsets = [0, 64], sizes = [16, 32], strides = [1, 1]} : vector<16x128xf32> to vector<16x32xf32>
    %26 = arith.truncf %25 : vector<16x32xf32> to vector<16x32xbf16>
    %27 = vector.extract_strided_slice %20 {offsets = [0, 96], sizes = [16, 32], strides = [1, 1]} : vector<16x128xf32> to vector<16x32xf32>
    %28 = arith.truncf %27 : vector<16x32xf32> to vector<16x32xbf16>
    %cst_9 = arith.constant dense<0.000000e+00> : vector<32x16xf32>
    %29 = tpu.matmul %24, %26, %cst_9 {dimension_numbers = #tpu.dot_dimension_numbers<[1], [1], [0], [0], [0, 0, 1, 0], [], []>} : vector<32x32xbf16>, vector<16x32xbf16>, vector<32x16xf32> -> vector<32x16xf32>
    %cst_10 = arith.constant -1.000000e+30 : f32
    %30 = vector.broadcast %cst_10 : f32 to vector<32x16xf32>
    %31 = arith.select %18, %29, %30 : vector<32x16xi1>, vector<32x16xf32>
    %cst_11 = arith.constant dense<0xFF800000> : vector<32xf32>
    %32 = vector.multi_reduction <maximumf>, %31, %cst_11 [1] : vector<32x16xf32> to vector<32xf32>
    %33 = vector.shape_cast %32 : vector<32xf32> to vector<32x1xf32>
    %34 = vector.broadcast %33 : vector<32x1xf32> to vector<32x16xf32>
    %35 = arith.subf %31, %34 : vector<32x16xf32>
    %36 = math.exp %35 : vector<32x16xf32>
    %cst_12 = arith.constant dense<0.000000e+00> : vector<32xf32>
    %37 = vector.multi_reduction <add>, %36, %cst_12 [1] : vector<32x16xf32> to vector<32xf32>
    %38 = vector.shape_cast %37 : vector<32xf32> to vector<32x1xf32>
    %39 = tpu.reciprocal %38 {approx = true} : vector<32x1xf32> -> vector<32x1xf32>
    %40 = vector.broadcast %39 : vector<32x1xf32> to vector<32x16xf32>
    %41 = arith.mulf %36, %40 : vector<32x16xf32>
    %42 = arith.truncf %41 : vector<32x16xf32> to vector<32x16xbf16>
    %cst_13 = arith.constant dense<0.000000e+00> : vector<32x32xf32>
    %43 = tpu.matmul %42, %28, %cst_13 {dimension_numbers = #tpu.dot_dimension_numbers<[1], [0], [0], [1], [0, 0, 1, 1], [], []>} : vector<32x16xbf16>, vector<16x32xbf16>, vector<32x32xf32> -> vector<32x32xf32>
    %44 = vector.extract_strided_slice %43 {offsets = [0, 0], sizes = [16, 32], strides = [1, 1]} : vector<32x32xf32> to vector<16x32xf32>
    %c0_14 = arith.constant 0 : index
    %c0_15 = arith.constant 0 : index
    %45 = vector.load %arg8[%c0_14, %c0_15] : memref<32x128xf32, #tpu.memory_space<vmem>>, vector<16x32xf32>
    tpu.vector_store %arg8[%c0_14, %c0_15], %44 {strides = array<i32>} : memref<32x128xf32, #tpu.memory_space<vmem>>, vector<16x32xf32>,
    %46 = vector.extract_strided_slice %43 {offsets = [16, 0], sizes = [16, 32], strides = [1, 1]} : vector<32x32xf32> to vector<16x32xf32>
    %c0_16 = arith.constant 0 : index
    %c32 = arith.constant 32 : index
    %47 = vector.load %arg8[%c0_16, %c32] : memref<32x128xf32, #tpu.memory_space<vmem>>, vector<16x32xf32>
    tpu.vector_store %arg8[%c0_16, %c32], %46 {strides = array<i32>} : memref<32x128xf32, #tpu.memory_space<vmem>>, vector<16x32xf32>,
    %48 = vector.extract_strided_slice %19 {offsets = [0, 128], sizes = [16, 128], strides = [1, 1]} : vector<16x256xf32> to vector<16x128xf32>
    %49 = vector.extract_strided_slice %48 {offsets = [0, 0], sizes = [16, 32], strides = [1, 1]} : vector<16x128xf32> to vector<16x32xf32>
    %50 = vector.extract_strided_slice %48 {offsets = [0, 32], sizes = [16, 32], strides = [1, 1]} : vector<16x128xf32> to vector<16x32xf32>
    %51 = tpu.concatenate %49, %50 in 0 : vector<16x32xf32>, vector<16x32xf32> -> vector<32x32xf32>
    %52 = arith.truncf %51 : vector<32x32xf32> to vector<32x32xbf16>
    %53 = vector.extract_strided_slice %48 {offsets = [0, 64], sizes = [16, 32], strides = [1, 1]} : vector<16x128xf32> to vector<16x32xf32>
    %54 = arith.truncf %53 : vector<16x32xf32> to vector<16x32xbf16>
    %55 = vector.extract_strided_slice %48 {offsets = [0, 96], sizes = [16, 32], strides = [1, 1]} : vector<16x128xf32> to vector<16x32xf32>
    %56 = arith.truncf %55 : vector<16x32xf32> to vector<16x32xbf16>
    %cst_17 = arith.constant dense<0.000000e+00> : vector<32x16xf32>
    %57 = tpu.matmul %52, %54, %cst_17 {dimension_numbers = #tpu.dot_dimension_numbers<[1], [1], [0], [0], [0, 0, 1, 0], [], []>} : vector<32x32xbf16>, vector<16x32xbf16>, vector<32x16xf32> -> vector<32x16xf32>
    %cst_18 = arith.constant -1.000000e+30 : f32
    %58 = vector.broadcast %cst_18 : f32 to vector<32x16xf32>
    %59 = arith.select %18, %57, %58 : vector<32x16xi1>, vector<32x16xf32>
    %cst_19 = arith.constant dense<0xFF800000> : vector<32xf32>
    %60 = vector.multi_reduction <maximumf>, %59, %cst_19 [1] : vector<32x16xf32> to vector<32xf32>
    %61 = vector.shape_cast %60 : vector<32xf32> to vector<32x1xf32>
    %62 = vector.broadcast %61 : vector<32x1xf32> to vector<32x16xf32>
    %63 = arith.subf %59, %62 : vector<32x16xf32>
    %64 = math.exp %63 : vector<32x16xf32>
    %cst_20 = arith.constant dense<0.000000e+00> : vector<32xf32>
    %65 = vector.multi_reduction <add>, %64, %cst_20 [1] : vector<32x16xf32> to vector<32xf32>
    %66 = vector.shape_cast %65 : vector<32xf32> to vector<32x1xf32>
    %67 = tpu.reciprocal %66 {approx = true} : vector<32x1xf32> -> vector<32x1xf32>
    %68 = vector.broadcast %67 : vector<32x1xf32> to vector<32x16xf32>
    %69 = arith.mulf %64, %68 : vector<32x16xf32>
    %70 = arith.truncf %69 : vector<32x16xf32> to vector<32x16xbf16>
    %cst_21 = arith.constant dense<0.000000e+00> : vector<32x32xf32>
    %71 = tpu.matmul %70, %56, %cst_21 {dimension_numbers = #tpu.dot_dimension_numbers<[1], [0], [0], [1], [0, 0, 1, 1], [], []>} : vector<32x16xbf16>, vector<16x32xbf16>, vector<32x32xf32> -> vector<32x32xf32>
    %72 = vector.extract_strided_slice %71 {offsets = [0, 0], sizes = [16, 32], strides = [1, 1]} : vector<32x32xf32> to vector<16x32xf32>
    %c0_22 = arith.constant 0 : index
    %c64 = arith.constant 64 : index
    %73 = vector.load %arg8[%c0_22, %c64] : memref<32x128xf32, #tpu.memory_space<vmem>>, vector<16x32xf32>
    tpu.vector_store %arg8[%c0_22, %c64], %72 {strides = array<i32>} : memref<32x128xf32, #tpu.memory_space<vmem>>, vector<16x32xf32>,
    %74 = vector.extract_strided_slice %71 {offsets = [16, 0], sizes = [16, 32], strides = [1, 1]} : vector<32x32xf32> to vector<16x32xf32>
    %c0_23 = arith.constant 0 : index
    %c96 = arith.constant 96 : index
    %75 = vector.load %arg8[%c0_23, %c96] : memref<32x128xf32, #tpu.memory_space<vmem>>, vector<16x32xf32>
    tpu.vector_store %arg8[%c0_23, %c96], %74 {strides = array<i32>} : memref<32x128xf32, #tpu.memory_space<vmem>>, vector<16x32xf32>,
    %76 = vector.extract_strided_slice %13 {offsets = [16, 0], sizes = [16, 256], strides = [1, 1]} : vector<32x256xf32> to vector<16x256xf32>
    %77 = vector.extract_strided_slice %76 {offsets = [0, 0], sizes = [16, 128], strides = [1, 1]} : vector<16x256xf32> to vector<16x128xf32>
    %78 = vector.extract_strided_slice %77 {offsets = [0, 0], sizes = [16, 32], strides = [1, 1]} : vector<16x128xf32> to vector<16x32xf32>
    %79 = vector.extract_strided_slice %77 {offsets = [0, 32], sizes = [16, 32], strides = [1, 1]} : vector<16x128xf32> to vector<16x32xf32>
    %80 = tpu.concatenate %78, %79 in 0 : vector<16x32xf32>, vector<16x32xf32> -> vector<32x32xf32>
    %81 = arith.truncf %80 : vector<32x32xf32> to vector<32x32xbf16>
    %82 = vector.extract_strided_slice %77 {offsets = [0, 64], sizes = [16, 32], strides = [1, 1]} : vector<16x128xf32> to vector<16x32xf32>
    %83 = arith.truncf %82 : vector<16x32xf32> to vector<16x32xbf16>
    %84 = vector.extract_strided_slice %77 {offsets = [0, 96], sizes = [16, 32], strides = [1, 1]} : vector<16x128xf32> to vector<16x32xf32>
    %85 = arith.truncf %84 : vector<16x32xf32> to vector<16x32xbf16>
    %cst_24 = arith.constant dense<0.000000e+00> : vector<32x16xf32>
    %86 = tpu.matmul %81, %83, %cst_24 {dimension_numbers = #tpu.dot_dimension_numbers<[1], [1], [0], [0], [0, 0, 1, 0], [], []>} : vector<32x32xbf16>, vector<16x32xbf16>, vector<32x16xf32> -> vector<32x16xf32>
    %cst_25 = arith.constant -1.000000e+30 : f32
    %87 = vector.broadcast %cst_25 : f32 to vector<32x16xf32>
    %88 = arith.select %18, %86, %87 : vector<32x16xi1>, vector<32x16xf32>
    %cst_26 = arith.constant dense<0xFF800000> : vector<32xf32>
    %89 = vector.multi_reduction <maximumf>, %88, %cst_26 [1] : vector<32x16xf32> to vector<32xf32>
    %90 = vector.shape_cast %89 : vector<32xf32> to vector<32x1xf32>
    %91 = vector.broadcast %90 : vector<32x1xf32> to vector<32x16xf32>
    %92 = arith.subf %88, %91 : vector<32x16xf32>
    %93 = math.exp %92 : vector<32x16xf32>
    %cst_27 = arith.constant dense<0.000000e+00> : vector<32xf32>
    %94 = vector.multi_reduction <add>, %93, %cst_27 [1] : vector<32x16xf32> to vector<32xf32>
    %95 = vector.shape_cast %94 : vector<32xf32> to vector<32x1xf32>
    %96 = tpu.reciprocal %95 {approx = true} : vector<32x1xf32> -> vector<32x1xf32>
    %97 = vector.broadcast %96 : vector<32x1xf32> to vector<32x16xf32>
    %98 = arith.mulf %93, %97 : vector<32x16xf32>
    %99 = arith.truncf %98 : vector<32x16xf32> to vector<32x16xbf16>
    %cst_28 = arith.constant dense<0.000000e+00> : vector<32x32xf32>
    %100 = tpu.matmul %99, %85, %cst_28 {dimension_numbers = #tpu.dot_dimension_numbers<[1], [0], [0], [1], [0, 0, 1, 1], [], []>} : vector<32x16xbf16>, vector<16x32xbf16>, vector<32x32xf32> -> vector<32x32xf32>
    %101 = vector.extract_strided_slice %100 {offsets = [0, 0], sizes = [16, 32], strides = [1, 1]} : vector<32x32xf32> to vector<16x32xf32>
    %c16 = arith.constant 16 : index
    %c0_29 = arith.constant 0 : index
    %102 = vector.load %arg8[%c16, %c0_29] : memref<32x128xf32, #tpu.memory_space<vmem>>, vector<16x32xf32>
    tpu.vector_store %arg8[%c16, %c0_29], %101 {strides = array<i32>} : memref<32x128xf32, #tpu.memory_space<vmem>>, vector<16x32xf32>,
    %103 = vector.extract_strided_slice %100 {offsets = [16, 0], sizes = [16, 32], strides = [1, 1]} : vector<32x32xf32> to vector<16x32xf32>
    %c16_30 = arith.constant 16 : index
    %c32_31 = arith.constant 32 : index
    %104 = vector.load %arg8[%c16_30, %c32_31] : memref<32x128xf32, #tpu.memory_space<vmem>>, vector<16x32xf32>
    tpu.vector_store %arg8[%c16_30, %c32_31], %103 {strides = array<i32>} : memref<32x128xf32, #tpu.memory_space<vmem>>, vector<16x32xf32>,
    %105 = vector.extract_strided_slice %76 {offsets = [0, 128], sizes = [16, 128], strides = [1, 1]} : vector<16x256xf32> to vector<16x128xf32>
    %106 = vector.extract_strided_slice %105 {offsets = [0, 0], sizes = [16, 32], strides = [1, 1]} : vector<16x128xf32> to vector<16x32xf32>
    %107 = vector.extract_strided_slice %105 {offsets = [0, 32], sizes = [16, 32], strides = [1, 1]} : vector<16x128xf32> to vector<16x32xf32>
    %108 = tpu.concatenate %106, %107 in 0 : vector<16x32xf32>, vector<16x32xf32> -> vector<32x32xf32>
    %109 = arith.truncf %108 : vector<32x32xf32> to vector<32x32xbf16>
    %110 = vector.extract_strided_slice %105 {offsets = [0, 64], sizes = [16, 32], strides = [1, 1]} : vector<16x128xf32> to vector<16x32xf32>
    %111 = arith.truncf %110 : vector<16x32xf32> to vector<16x32xbf16>
    %112 = vector.extract_strided_slice %105 {offsets = [0, 96], sizes = [16, 32], strides = [1, 1]} : vector<16x128xf32> to vector<16x32xf32>
    %113 = arith.truncf %112 : vector<16x32xf32> to vector<16x32xbf16>
    %cst_32 = arith.constant dense<0.000000e+00> : vector<32x16xf32>
    %114 = tpu.matmul %109, %111, %cst_32 {dimension_numbers = #tpu.dot_dimension_numbers<[1], [1], [0], [0], [0, 0, 1, 0], [], []>} : vector<32x32xbf16>, vector<16x32xbf16>, vector<32x16xf32> -> vector<32x16xf32>
    %cst_33 = arith.constant -1.000000e+30 : f32
    %115 = vector.broadcast %cst_33 : f32 to vector<32x16xf32>
    %116 = arith.select %18, %114, %115 : vector<32x16xi1>, vector<32x16xf32>
    %cst_34 = arith.constant dense<0xFF800000> : vector<32xf32>
    %117 = vector.multi_reduction <maximumf>, %116, %cst_34 [1] : vector<32x16xf32> to vector<32xf32>
    %118 = vector.shape_cast %117 : vector<32xf32> to vector<32x1xf32>
    %119 = vector.broadcast %118 : vector<32x1xf32> to vector<32x16xf32>
    %120 = arith.subf %116, %119 : vector<32x16xf32>
    %121 = math.exp %120 : vector<32x16xf32>
    %cst_35 = arith.constant dense<0.000000e+00> : vector<32xf32>
    %122 = vector.multi_reduction <add>, %121, %cst_35 [1] : vector<32x16xf32> to vector<32xf32>
    %123 = vector.shape_cast %122 : vector<32xf32> to vector<32x1xf32>
    %124 = tpu.reciprocal %123 {approx = true} : vector<32x1xf32> -> vector<32x1xf32>
    %125 = vector.broadcast %124 : vector<32x1xf32> to vector<32x16xf32>
    %126 = arith.mulf %121, %125 : vector<32x16xf32>
    %127 = arith.truncf %126 : vector<32x16xf32> to vector<32x16xbf16>
    %cst_36 = arith.constant dense<0.000000e+00> : vector<32x32xf32>
    %128 = tpu.matmul %127, %113, %cst_36 {dimension_numbers = #tpu.dot_dimension_numbers<[1], [0], [0], [1], [0, 0, 1, 1], [], []>} : vector<32x16xbf16>, vector<16x32xbf16>, vector<32x32xf32> -> vector<32x32xf32>
    %129 = vector.extract_strided_slice %128 {offsets = [0, 0], sizes = [16, 32], strides = [1, 1]} : vector<32x32xf32> to vector<16x32xf32>
    %c16_37 = arith.constant 16 : index
    %c64_38 = arith.constant 64 : index
    %130 = vector.load %arg8[%c16_37, %c64_38] : memref<32x128xf32, #tpu.memory_space<vmem>>, vector<16x32xf32>
    tpu.vector_store %arg8[%c16_37, %c64_38], %129 {strides = array<i32>} : memref<32x128xf32, #tpu.memory_space<vmem>>, vector<16x32xf32>,
    %131 = vector.extract_strided_slice %128 {offsets = [16, 0], sizes = [16, 32], strides = [1, 1]} : vector<32x32xf32> to vector<16x32xf32>
    %c16_39 = arith.constant 16 : index
    %c96_40 = arith.constant 96 : index
    %132 = vector.load %arg8[%c16_39, %c96_40] : memref<32x128xf32, #tpu.memory_space<vmem>>, vector<16x32xf32>
    tpu.vector_store %arg8[%c16_39, %c96_40], %131 {strides = array<i32>} : memref<32x128xf32, #tpu.memory_space<vmem>>, vector<16x32xf32>,
    %c0_41 = arith.constant 0 : index
    %c0_42 = arith.constant 0 : index
    %133 = vector.load %arg8[%c0_41, %c0_42] : memref<32x128xf32, #tpu.memory_space<vmem>>, vector<32x128xf32>
    %134 = arith.truncf %133 : vector<32x128xf32> to vector<32x128xbf16>
    %c0_43 = arith.constant 0 : index
    %c0_44 = arith.constant 0 : index
    %135 = vector.load %arg6[%c0_43, %c0_44] : memref<128x128xbf16, #tpu.memory_space<vmem>>, vector<128x128xbf16>
    %cst_45 = arith.constant dense<0.000000e+00> : vector<32x128xf32>
    %136 = tpu.matmul %134, %135, %cst_45 {dimension_numbers = #tpu.dot_dimension_numbers<[1], [0], [0], [1], [0, 0, 1, 1], [], []>} : vector<32x128xbf16>, vector<128x128xbf16>, vector<32x128xf32> -> vector<32x128xf32>
    %c0_46 = arith.constant 0 : index
    %c0_47 = arith.constant 0 : index
    %137 = vector.load %arg7[%c0_46, %c0_47] : memref<32x128xf32, #tpu.memory_space<vmem>>, vector<32x128xf32>
    tpu.vector_store %arg7[%c0_46, %c0_47], %136 {strides = array<i32>} : memref<32x128xf32, #tpu.memory_space<vmem>>, vector<32x128xf32>,
    return
  }
  func.func @transform_0(%arg0: i32) -> (i32, i32) {
    %c0_i32 = arith.constant 0 : i32
    %c0_i32_0 = arith.constant 0 : i32
    return %arg0, %c0_i32 : i32, i32
  }
  func.func @transform_1(%arg0: i32) -> (i32, i32) {
    %c0_i32 = arith.constant 0 : i32
    %c0_i32_0 = arith.constant 0 : i32
    %c0_i32_1 = arith.constant 0 : i32
    return %c0_i32, %c0_i32_0 : i32, i32
  }
  func.func @transform_2(%arg0: i32) -> (i32, i32) {
    %c0_i32 = arith.constant 0 : i32
    %c0_i32_0 = arith.constant 0 : i32
    return %arg0, %c0_i32 : i32, i32
  }
  func.func @transform_3(%arg0: i32) -> (i32, i32) {
    %c0_i32 = arith.constant 0 : i32
    %c0_i32_0 = arith.constant 0 : i32
    return %arg0, %c0_i32 : i32, i32
  }
  func.func @transform_4(%arg0: i32) -> (i32, i32) {
    %c0_i32 = arith.constant 0 : i32
    %c0_i32_0 = arith.constant 0 : i32
    return %arg0, %c0_i32 : i32, i32
  }
  func.func @transform_5(%arg0: i32) -> (i32, i32) {
    %c0_i32 = arith.constant 0 : i32
    %c0_i32_0 = arith.constant 0 : i32
    %c0_i32_1 = arith.constant 0 : i32
    return %c0_i32, %c0_i32_0 : i32, i32
  }
  func.func @transform_6(%arg0: i32) -> (i32, i32) {
    %c0_i32 = arith.constant 0 : i32
    %c0_i32_0 = arith.constant 0 : i32
    return %arg0, %c0_i32 : i32, i32
  }
}

</mosaic_0001>

<bundles_post_ra>
// kernel: tpu_custom_call.1
= control target key start
LH: loop header
LB: loop body
LE: loop exit
PB: predicated region body
PF: predicated region fallthrough
CT: control target
= control target key end

     0   :  { %11 = vsyncpa [#allocation4], 0  ;;  %s2213_s0 = inlined_call_operand.hbm [shape: f32[32,128], index: 0, kind: input, shape index: {}]   ;;  %s2214_s1 = inlined_call_operand.hbm [shape: bf16[128,256], index: 1, kind: input, shape index: {}]   ;;  %s2215_s2 = inlined_call_operand.hbm [shape: f32[32,256], index: 2, kind: input, shape index: {}]   ;;  %s2216_s3 = inlined_call_operand.hbm [shape: f32[32,256], index: 3, kind: input, shape index: {}]   ;;  %s2217_s4 = inlined_call_operand.hbm [shape: f32[32,256], index: 4, kind: input, shape index: {}]   ;;  %s2218_s5 = inlined_call_operand.hbm [shape: bf16[128,128], index: 5, kind: input, shape index: {}]   ;;  %s2219_s6 = inlined_call_operand.hbm [shape: f32[32,128], index: 6, kind: output, shape index: {}]  }
   0x1   :  { %12 = vsyncpa [#allocation7], 0 }
   0x2   :  { %13 = vsyncpa [#allocation10], 0 }
   0x3   :  { %14 = vsyncpa [#allocation13], 0 }
   0x4   :  { %15 = vsyncpa [#allocation5], 0  ;;  %s1762_s21 = smov [#allocation6]   ;;  %s1598_s25 = scalar_lea.hbm %s2214_s1, 2048 }
   0x5   :  { %s33_s22 = sshll.u32 %s1762_s21, 4  ;;  %p1599_p0 = scmp.ne.s32.totalorder %s2214_s1, %s1598_s25  ;;  %s34_s22 = int_to_ptr.vmem [resolvable:$true] %s33_s22 }
   0x6   :  { %p1602_p1 = scmp.lt.u32.totalorder %s1598_s25, %s2214_s1 }
   0x8   :  { %p1604_p2 = pnand %p1602_p1, %p1599_p0 }
   0xa   :  { %1607 = shalt.err (!%p1604_p2)
}
   0xb   :  { %s1608_s30 = scalar_lea.vmem %s34_s22, 2048  ;;  %p1613_p4 = scmp.lt.s32.totalorder %s34_s22, %s34_s22 }
   0xc   :  { %p1609_p3 = scmp.ne.s32.totalorder %s34_s22, %s1608_s30  ;;  %p1614_p5 = scmp.lt.s32.totalorder %s1608_s30, %s1608_s30 }
   0xe   :  { %p1615_p6 = por %p1614_p5, %p1613_p4 }
  0x10   :  { %p1616_p7 = pnand %p1615_p6, %p1609_p3 }
  0x12   :  { %1619 = shalt.err (!%p1616_p7)
}
  0x13   :  { %s1763_s7 = smov 128   ;;  %s1764_s8 = smov 8  }
  0x14   :  { %39 = dma.hbm_to_vmem [thread:$0]  %s2214_s1, 2048, %s34_s22, [#allocation7], %s1763_s7, %s1763_s7, %s1764_s8  }
  0x15   :  { %s1765_s11 = smov [#allocation9]   ;;  %s1766_s13 = smov [#allocation3]  }
  0x16   :  { %s57_s12 = sshll.u32 %s1765_s11, 4  ;;  %s21_s14 = sshll.u32 %s1766_s13, 4  ;;  %s58_s12 = int_to_ptr.vmem [resolvable:$true] %s57_s12  ;;  %s22_s14 = int_to_ptr.vmem [resolvable:$true] %s21_s14 }
  0x17   :  { %s1620_s17 = scalar_lea.hbm %s2216_s3, 1024 }
  0x18   :  { %p1621_p8 = scmp.ne.s32.totalorder %s2216_s3, %s1620_s17  ;;  %p1624_p9 = scmp.lt.u32.totalorder %s1620_s17, %s2216_s3 }
  0x1a   :  { %p1626_p10 = pnand %p1624_p9, %p1621_p8 }
  0x1c   :  { %1629 = shalt.err (!%p1626_p10)
}
  0x1d   :  { %s1630_s1 = scalar_lea.vmem %s58_s12, 1024  ;;  %p1635_p12 = scmp.lt.s32.totalorder %s58_s12, %s58_s12 }
  0x1e   :  { %p1631_p11 = scmp.ne.s32.totalorder %s58_s12, %s1630_s1  ;;  %p1636_p13 = scmp.lt.s32.totalorder %s1630_s1, %s1630_s1 }
  0x20   :  { %p1637_p0 = por %p1636_p13, %p1635_p12 }
  0x22   :  { %p1638_p1 = pnand %p1637_p0, %p1631_p11 }
  0x24   :  { %1641 = shalt.err (!%p1638_p1)
}
  0x25   :  { %s1767_s22 = smov 256   ;;  %s1768_s23 = smov 16  }
  0x26   :  { %63 = dma.hbm_to_vmem [thread:$0]  %s2216_s3, 1024, %s58_s12, [#allocation10], %s1767_s22, %s1767_s22, %s1768_s23  }
  0x27   :  { %s1642_s28 = scalar_lea.hbm %s2213_s0, 512 }
  0x28   :  { %p1643_p2 = scmp.ne.s32.totalorder %s2213_s0, %s1642_s28  ;;  %p1646_p3 = scmp.lt.u32.totalorder %s1642_s28, %s2213_s0 }
  0x2a   :  { %p1648_p4 = pnand %p1646_p3, %p1643_p2 }
  0x2c   :  { %1651 = shalt.err (!%p1648_p4)
}
  0x2d   :  { %s1652_s11 = scalar_lea.vmem %s22_s14, 512  ;;  %p1657_p6 = scmp.lt.s32.totalorder %s22_s14, %s22_s14 }
  0x2e   :  { %p1653_p5 = scmp.ne.s32.totalorder %s22_s14, %s1652_s11  ;;  %p1658_p7 = scmp.lt.s32.totalorder %s1652_s11, %s1652_s11 }
  0x30   :  { %p1659_p8 = por %p1658_p7, %p1657_p6 }
  0x32   :  { %p1660_p9 = pnand %p1659_p8, %p1653_p5 }
  0x34   :  { %1663 = shalt.err (!%p1660_p9)
}
  0x35   :  { %27 = dma.hbm_to_vmem [thread:$0]  %s2213_s0, 512, %s22_s14, [#allocation4], %s1763_s7, %s1763_s7, %s1764_s8  }
  0x36   :  { %s1769_s13 = smov [#allocation8]   ;;  %s1770_s16 = smov [#allocation11]  }
  0x37   :  { %s45_s15 = sshll.u32 %s1769_s13, 4  ;;  %s69_s17 = sshll.u32 %s1770_s16, 4  ;;  %s46_s15 = int_to_ptr.vmem [resolvable:$true] %s45_s15  ;;  %s70_s17 = int_to_ptr.vmem [resolvable:$true] %s69_s17 }
  0x38   :  { %s1664_s20 = scalar_lea.hbm %s2215_s2, 1024 }
  0x39   :  { %p1665_p10 = scmp.ne.s32.totalorder %s2215_s2, %s1664_s20  ;;  %p1668_p11 = scmp.lt.u32.totalorder %s1664_s20, %s2215_s2 }
  0x3b   :  { %p1670_p12 = pnand %p1668_p11, %p1665_p10 }
  0x3d   :  { %1673 = shalt.err (!%p1670_p12)
}
  0x3e   :  { %s1674_s0 = scalar_lea.vmem %s46_s15, 1024  ;;  %p1679_p0 = scmp.lt.s32.totalorder %s46_s15, %s46_s15 }
  0x3f   :  { %p1675_p13 = scmp.ne.s32.totalorder %s46_s15, %s1674_s0  ;;  %p1680_p1 = scmp.lt.s32.totalorder %s1674_s0, %s1674_s0 }
  0x41   :  { %p1681_p2 = por %p1680_p1, %p1679_p0 }
  0x43   :  { %p1682_p3 = pnand %p1681_p2, %p1675_p13 }
  0x45   :  { %1685 = shalt.err (!%p1682_p3)
}
  0x46   :  { %51 = dma.hbm_to_vmem [thread:$0]  %s2215_s2, 1024, %s46_s15, [#allocation7], %s1767_s22, %s1767_s22, %s1768_s23  }
  0x47   :  { %s1686_s29 = scalar_lea.hbm %s2217_s4, 1024 }
  0x48   :  { %p1687_p4 = scmp.ne.s32.totalorder %s2217_s4, %s1686_s29  ;;  %p1690_p5 = scmp.lt.u32.totalorder %s1686_s29, %s2217_s4 }
  0x4a   :  { %p1692_p6 = pnand %p1690_p5, %p1687_p4 }
  0x4c   :  { %1695 = shalt.err (!%p1692_p6)
}
  0x4d   :  { %s1696_s3 = scalar_lea.vmem %s70_s17, 1024  ;;  %p1701_p8 = scmp.lt.s32.totalorder %s70_s17, %s70_s17 }
  0x4e   :  { %p1697_p7 = scmp.ne.s32.totalorder %s70_s17, %s1696_s3  ;;  %p1702_p9 = scmp.lt.s32.totalorder %s1696_s3, %s1696_s3 }
  0x50   :  { %p1703_p10 = por %p1702_p9, %p1701_p8 }
  0x52   :  { %p1704_p11 = pnand %p1703_p10, %p1697_p7 }
  0x54   :  { %1707 = shalt.err (!%p1704_p11)
}
  0x55   :  { %75 = dma.hbm_to_vmem [thread:$0]  %s2217_s4, 1024, %s70_s17, [#allocation10], %s1767_s22, %s1767_s22, %s1768_s23  }
  0x56   :  { %s1771_s13 = smov [#allocation12]   ;;  %s1708_s19 = scalar_lea.hbm %s2218_s5, 1024 }
  0x57   :  { %s81_s15 = sshll.u32 %s1771_s13, 4  ;;  %p1709_p12 = scmp.ne.s32.totalorder %s2218_s5, %s1708_s19  ;;  %s82_s15 = int_to_ptr.vmem [resolvable:$true] %s81_s15 }
  0x58   :  { %p1712_p13 = scmp.lt.u32.totalorder %s1708_s19, %s2218_s5 }
  0x5a   :  { %p1714_p0 = pnand %p1712_p13, %p1709_p12 }
  0x5c   :  { %1717 = shalt.err (!%p1714_p0)
}
  0x5d   :  { %s1718_s25 = scalar_lea.vmem %s82_s15, 1024  ;;  %p1723_p2 = scmp.lt.s32.totalorder %s82_s15, %s82_s15 }
  0x5e   :  { %p1719_p1 = scmp.ne.s32.totalorder %s82_s15, %s1718_s25  ;;  %p1724_p3 = scmp.lt.s32.totalorder %s1718_s25, %s1718_s25 }
  0x60   :  { %p1725_p4 = por %p1724_p3, %p1723_p2 }
  0x62   :  { %p1726_p5 = pnand %p1725_p4, %p1719_p1 }
  0x64   :  { %1729 = shalt.err (!%p1726_p5)
}
  0x65   :  { %s1772_s4 = smov 64   ;;  %s1773_s22 = smov 4  }
  0x66   :  { %87 = dma.hbm_to_vmem [thread:$0]  %s2218_s5, 1024, %s82_s15, [#allocation13], %s1772_s4, %s1772_s4, %s1773_s22  }
  0x67   :  { %1752 = dma.done.wait [#allocation4], 512  }
  0x68   :  { %1753 = vsyncadd [#allocation4], 4294966784 }
  0x69   :  { %1754 = dma.done.wait [#allocation7], 3072  }
  0x6a   :  { %1755 = vsyncadd [#allocation7], 4294964224 }
  0x6b   :  { %1756 = dma.done.wait [#allocation10], 2048  }
  0x6c   :  { %1757 = vsyncadd [#allocation10], 4294965248 }
  0x6d   :  { %1758 = dma.done.wait [#allocation13], 1024  }
  0x6e   :  { %1759 = vsyncadd [#allocation13], 4294966272  ;;  %v1774_v0 = vmov 0   ;;  %v1502_v1 = vld [vmem:[#allocation6 + $0x4] ss:$8 sps:$4 sm:$0xff]   ;;  %v109_v24 = vld [vmem:[#allocation3 + $0x10] sm:$0xff]  ;;  %v294_v27 = vlaneseq }
  0x6f   :  { %241 = vmatprep.mubr.bf16.mxu0 %v1774_v0  ;;  %v1504_v2 = vld [vmem:[#allocation6] ss:$8 sps:$4 sm:$0xff]   ;;  %209 = vmatprep.subr.bf16.mxu0 %v1502_v1  ;;  %v1505_v3 = vld [vmem:[#allocation6 + $0x14] ss:$8 sps:$4 sm:$0xff]   ;;  %v1507_v4 = vld [vmem:[#allocation6 + $0x10] ss:$8 sps:$4 sm:$0xff]  }
  0x70   :  { %210 = vmatpush1.bf16.msra.mxu0 %v1504_v2  ;;  %v1508_v5 = vld [vmem:[#allocation6 + $0x24] ss:$8 sps:$4 sm:$0xff]   ;;  %v1510_v6 = vld [vmem:[#allocation6 + $0x20] ss:$8 sps:$4 sm:$0xff]   ;;  %v1511_v7 = vld [vmem:[#allocation6 + $0x34] ss:$8 sps:$4 sm:$0xff]  }
  0x71   :  { %211 = vmatprep.subr.bf16.mxu0 %v1505_v3  ;;  %v1513_v8 = vld [vmem:[#allocation6 + $0x30] ss:$8 sps:$4 sm:$0xff]   ;;  %v1514_v9 = vld [vmem:[#allocation6 + $0x44] ss:$8 sps:$4 sm:$0xff]   ;;  %v1516_v10 = vld [vmem:[#allocation6 + $0x40] ss:$8 sps:$4 sm:$0xff]  }
  0x72   :  { %v1517_v11 = vld [vmem:[#allocation6 + $0x54] ss:$8 sps:$4 sm:$0xff]   ;;  %v1519_v12 = vld [vmem:[#allocation6 + $0x50] ss:$8 sps:$4 sm:$0xff]   ;;  %v1520_v13 = vld [vmem:[#allocation6 + $0x64] ss:$8 sps:$4 sm:$0xff]  }
  0x73   :  { %v1522_v14 = vld [vmem:[#allocation6 + $0x60] ss:$8 sps:$4 sm:$0xff]   ;;  %v1523_v15 = vld [vmem:[#allocation6 + $0x74] ss:$8 sps:$4 sm:$0xff]   ;;  %v1525_v16 = vld [vmem:[#allocation6 + $0x70] ss:$8 sps:$4 sm:$0xff]  }
  0x74   :  { %212 = vmatpush1.bf16.msra.mxu0 %v1507_v4  ;;  %v107_v17 = vld [vmem:[#allocation3] sm:$0xff]  ;;  %v108_v18 = vld [vmem:[#allocation3 + $0x8] sm:$0xff]  ;;  %v110_v25 = vld [vmem:[#allocation3 + $0x18] sm:$0xff]  ;;  %s1775_s5 = smov 124   ;;  %v1913_v28 = vand.u32 127, %v294_v27  ;;  %vm404_vm2 = vcmask 261120  }
  0x75   :  { %213 = vmatprep.subr.bf16.mxu0 %v1508_v5  ;;  %v111_v19 = vpack.c.bf16 %v108_v18, %v107_v17  ;;  %v112_v26 = vpack.c.bf16 %v110_v25, %v109_v24  ;;  %v263_v29 = vld [vmem:[#allocation8 + $0x8] sm:$0xff]  ;;  %v305_v39 = vld [vmem:[#allocation9] sm:$0xff]  ;;  %v265_v42 = vld [vmem:[#allocation8 + $0x18] sm:$0xff]  ;;  %s1776_s0 = smov 96   ;;  %vm467_vm4 = vcmask 130048   ;;  %s1777_s14 = smov 32  }
  0x76   :  { %vm296_vm0 = vcmp.lt.s32.totalorder %v1913_v28, 4  ;;  %v306_v31 = vld [vmem:[#allocation9 + $0x8] sm:$0xff]  ;;  %v262_v41 = vld [vmem:[#allocation8] sm:$0xff]  ;;  %v307_v44 = vld [vmem:[#allocation9 + $0x10] sm:$0xff]  ;;  %vm345_vm1 = vcmp.lt.s32.totalorder %v1913_v28, 124  ;;  %vm582_vm8 = vcmask 523520  }
  0x77   :  { %v308_v45 = vld [vmem:[#allocation9 + $0x18] sm:$0xff]  ;;  %v264_v46 = vld [vmem:[#allocation8 + $0x10] sm:$0xff]  ;;  %v354_v55 = vld [vmem:[#allocation11] sm:$0xff]  ;;  %vm772_vm9 = vcmask 785920   ;;  %vm783_vm10 = vcmask 1048320   ;;  %s1778_s26 = smov [#allocation14]  }
  0x78   :  { %214 = vmatpush1.bf16.msra.mxu0 %v1510_v6  ;;  %v355_v56 = vld [vmem:[#allocation11 + $0x8] sm:$0xff]  ;;  %v356_v59 = vld [vmem:[#allocation11 + $0x10] sm:$0xff]  ;;  %v357_v60 = vld [vmem:[#allocation11 + $0x18] sm:$0xff]  ;;  %s1304_s27 = sshll.u32 %s1778_s26, 4  ;;  %s1305_s27 = int_to_ptr.vmem [resolvable:$true] %s1304_s27 }
  0x79   :  { %215 = vmatprep.subr.bf16.mxu0 %v1511_v7  ;;  %s1730_s28 = scalar_lea.vmem %s1305_s27, 512  ;;  %p1735_p7 = scmp.lt.s32.totalorder %s1305_s27, %s1305_s27 }
  0x7a   :  { %p1731_p6 = scmp.ne.s32.totalorder %s1305_s27, %s1730_s28  ;;  %p1736_p8 = scmp.lt.s32.totalorder %s1730_s28, %s1730_s28 }
  0x7c   :  { %216 = vmatpush1.bf16.msra.mxu0 %v1513_v8  ;;  %p1737_p9 = por %p1736_p8, %p1735_p7 }
  0x7d   :  { %217 = vmatprep.subr.bf16.mxu0 %v1514_v9 }
  0x7e   :  { %p1738_p10 = pnand %p1737_p9, %p1731_p6 }
  0x80   :  { %218 = vmatpush1.bf16.msra.mxu0 %v1516_v10 }
  0x81   :  { %219 = vmatprep.subr.bf16.mxu0 %v1517_v11 }
  0x84   :  { %220 = vmatpush1.bf16.msra.mxu0 %v1519_v12 }
  0x85   :  { %221 = vmatprep.subr.bf16.mxu0 %v1520_v13 }
  0x88   :  { %222 = vmatpush1.bf16.msra.mxu0 %v1522_v14 }
  0x89   :  { %223 = vmatprep.subr.bf16.mxu0 %v1523_v15 }
  0x8c   :  { %224 = vmatpush1.bf16.msra.mxu0 %v1525_v16 }
  0x8f   :  { %242 = vmatmul.mubr.bf16.vlgmr.msra.gmra.mrb[0].mxu0 %v111_v19 }
  0x90   :  { %251 = vmatprep.mubr.bf16.mxu0 %v1774_v0 }
  0x97   :  { %252 = vmatmul.mubr.bf16.gmra.mrb[4].mxu0 %v112_v26 }
 0x162   :  { %v243_v20 = vpop.f32.mrb[0].mxu0 }
 0x163   :  { %278 = vrot.lane.b32.xlu0 %v243_v20, %s1773_s22  ;;  %v245_v21 = vpop.f32.mrb[1].mxu0  ;;  %v270_v51 = vmul.f32 %v262_v41, %v243_v20 }
 0x164   :  { %286 = vrot.lane.b32.xlu1 %v245_v21, %s1773_s22  ;;  %v247_v22 = vpop.f32.mrb[2].mxu0  ;;  %v271_v34 = vmul.f32 %v263_v29, %v245_v21  ;;  %v379_v29 = vshrl.u32 %v294_v27, 7 }
 0x165   :  { %v249_v23 = vpop.f32.mrb[3].mxu0  ;;  %v272_v57 = vmul.f32 %v264_v46, %v247_v22 }
 0x166   :  { %v273_v52 = vmul.f32 %v265_v42, %v249_v23 }
 0x167   :  { %329 = vrot.lane.b32.xlu0 %v243_v20, %s1775_s5 }
 0x168   :  { %331 = vrot.lane.b32.xlu1 %v247_v22, %s1775_s5 }
 0x16a   :  { %v1946_v17 = vpop.f32.mrb[4].mxu0 }
 0x16b   :  { %280 = vrot.lane.b32.xlu0 %v247_v22, %s1773_s22  ;;  %v1948_v18 = vpop.f32.mrb[5].mxu0 }
 0x16c   :  { %288 = vrot.lane.b32.xlu1 %v249_v23, %s1773_s22  ;;  %v1950_v19 = vpop.f32.mrb[6].mxu0 }
 0x16d   :  { %v1952_v20 = vpop.f32.mrb[7].mxu0 }
 0x16f   :  { %337 = vrot.lane.b32.xlu0 %v245_v21, %s1775_s5 }
 0x170   :  { %339 = vrot.lane.b32.xlu1 %v249_v23, %s1775_s5 }
 0x1d5   :  { %v279_v30 = vpop.permute.xlu0 %278 }
 0x1d6   :  { %v287_v32 = vpop.permute.xlu1 %286 }
 0x1d7   :  { %v297_v33 = vsel %vm296_vm0, %v279_v30, %v287_v32  ;;  %v301_v40 = vsel %vm296_vm0, %v287_v32, %v279_v30  ;;  %v381_v30 = vadd.s32 16, %v379_v29  ;;  %v383_v32 = vand.u32 15, %v379_v29 }
 0x1d8   :  { %v314_v35 = vmul.f32 %v306_v31, %v297_v33  ;;  %v313_v47 = vmul.f32 %v305_v39, %v301_v40  ;;  %v380_v31 = vadd.s32 8, %v379_v29 }
 0x1d9   :  { %v330_v36 = vpop.permute.xlu0 %329  ;;  %v385_v33 = vand.u32 15, %v381_v30  ;;  %vm1959_vm3 = vcmp.le.s32.totalorder %v1913_v28, %v383_v32 }
 0x1da   :  { %v322_v37 = vadd.f32 %v314_v35, %v271_v34  ;;  %v332_v38 = vpop.permute.xlu1 %331  ;;  %v321_v61 = vadd.f32 %v313_v47, %v270_v51  ;;  %v382_v34 = vadd.s32 24, %v379_v29  ;;  %v384_v35 = vand.u32 15, %v380_v31 }
 0x1db   :  { %vm1964_vm5 = vcmp.le.s32.totalorder %v1913_v28, %v385_v33 }
 0x1dc   :  { %v386_v27 = vand.u32 15, %v382_v34  ;;  %vm1969_vm6 = vcmp.le.s32.totalorder %v1913_v28, %v384_v35 }
 0x1dd   :  { %v281_v43 = vpop.permute.xlu0 %280 }
 0x1de   :  { %v289_v48 = vpop.permute.xlu1 %288  ;;  %vm1981_vm7 = vcmp.le.s32.totalorder %v1913_v28, %v386_v27 }
 0x1df   :  { %v298_v49 = vsel %vm296_vm0, %v281_v43, %v289_v48  ;;  %v302_v50 = vsel %vm296_vm0, %v289_v48, %v281_v43 }
 0x1e0   :  { %v315_v53 = vmul.f32 %v307_v44, %v302_v50  ;;  %v316_v54 = vmul.f32 %v308_v45, %v298_v49 }
 0x1e1   :  { %v338_v58 = vpop.permute.xlu0 %337 }
 0x1e2   :  { %v324_v62 = vadd.f32 %v316_v54, %v273_v52  ;;  %v346_v63 = vsel %vm345_vm1, %v330_v36, %v338_v58  ;;  %v350_v0 = vsel %vm345_vm1, %v338_v58, %v330_v36  ;;  %v340_v1 = vpop.permute.xlu1 %339  ;;  %v323_v6 = vadd.f32 %v315_v53, %v272_v57 }
 0x1e3   :  { %v362_v2 = vmul.f32 %v354_v55, %v346_v63  ;;  %v363_v3 = vmul.f32 %v355_v56, %v350_v0  ;;  %v347_v4 = vsel %vm345_vm1, %v332_v38, %v340_v1  ;;  %v351_v5 = vsel %vm345_vm1, %v340_v1, %v332_v38 }
 0x1e4   :  { %v364_v7 = vmul.f32 %v356_v59, %v347_v4  ;;  %v365_v8 = vmul.f32 %v357_v60, %v351_v5 }
 0x1e5   :  { %v370_v9 = vadd.f32 %v362_v2, %v321_v61  ;;  %v1933_v10 = vadd.f32 %v363_v3, %v322_v37 }
 0x1e6   :  { %v372_v11 = vadd.f32 %v364_v7, %v323_v6  ;;  %v1935_v12 = vadd.f32 %v365_v8, %v324_v62 }
 0x1e8   :  { %v1482_v13 = vpack.i.bf16 %v372_v11, %v370_v9  ;;  %v399_v14 = vpack.c.bf16 %v372_v11, %v370_v9  ;;  %v1487_v15 = vpack.i.bf16 %v1935_v12, %v1933_v10  ;;  %v1941_v16 = vpack.c.bf16 %v1935_v12, %v1933_v10 }
 0x1ea   :  { %1483 = vrot.lane.b32.xlu1 %v1482_v13, %s1776_s0  ;;  %402 = vrot.lane.b32.xlu0 %v399_v14, %s1772_s4 }
 0x1eb   :  { %1395 = vmatprep.mubr.msk.bf16.mxu0 %vm404_vm2, %v399_v14 }
 0x25c   :  { %v1484_v21 = vpop.permute.xlu1 %1483  ;;  %v403_v22 = vpop.permute.xlu0 %402 }
 0x25d   :  { %v412_v23 = vsel %vm404_vm2, %v403_v22, 0  ;;  %1461 = vmatprep.subr.msk.bf16.mxu0 %vm404_vm2, %v403_v22  ;;  %v1486_v24 = vunpack.i.h.bf16 %v1484_v21  ;;  %v1485_v25 = vunpack.i.l.bf16 %v1484_v21 }
 0x25e   :  { %1394 = vmatpush3.bf16.xpose.msra.mxu0 %v412_v23 }
 0x25f   :  { %v400_v26 = vpack.c.bf16 %v1486_v24, %v1485_v25 }
 0x265   :  { %1396 = vmatmul.mubr.msk.bf16.vlgmr.msra.gmra.mrb[8].mxu0 %vm404_vm2, %v400_v26 }
 0x338   :  { %v1397_v37 = vpop.f32.mrb[8].mxu0 }
 0x339   :  { %v448_v39 = vpop.f32.mrb[9].mxu0  ;;  %v465_v45 = vsel %vm1964_vm5, %v1397_v37, -1e+30 }
 0x33a   :  { %v463_v41 = vsel %vm1959_vm3, %v448_v39, -1e+30  ;;  %v1398_v42 = vpop.f32.mrb[10].mxu0  ;;  %v474_v49 = vsel %vm467_vm4, %v465_v45, -inf }
 0x33b   :  { %v451_v43 = vpop.f32.mrb[11].mxu0  ;;  %v468_v44 = vsel %vm467_vm4, %v463_v41, -inf  ;;  %v466_v50 = vsel %vm1981_vm7, %v1398_v42, -1e+30 }
 0x33c   :  { %v464_v46 = vsel %vm1969_vm6, %v451_v43, -1e+30  ;;  %469 = vmax.xlane.f32.xlu0 %v468_v44  ;;  %v477_v51 = vsel %vm467_vm4, %v466_v50, -inf }
 0x33d   :  { %v471_v48 = vsel %vm467_vm4, %v464_v46, -inf }
 0x33e   :  { %472 = vmax.xlane.f32.xlu1 %v471_v48 }
 0x340   :  { %475 = vmax.xlane.f32.xlu0 %v474_v49 }
 0x344   :  { %478 = vmax.xlane.f32.xlu0 %v477_v51 }
 0x34f   :  { %514 = vrot.lane.b32.xlu1 %v399_v14, %s1777_s14 }
 0x3c9   :  { %v470_v52 = vpop.xlane.xlu0 %469 }
 0x3ca   :  { %v480_v54 = vsub.f32 %v463_v41, %v470_v52 }
 0x3cb   :  { %v473_v53 = vpop.xlane.xlu1 %472 }
 0x3cc   :  { %v484_v58 = vmul.f32 1.442695, %v480_v54  ;;  %v481_v59 = vsub.f32 %v464_v46, %v473_v53 }
 0x3cd   :  { %v476_v55 = vpop.xlane.xlu0 %475 }
 0x3ce   :  { %v482_v56 = vsub.f32 %v465_v45, %v476_v55  ;;  %v486_v63 = vmul.f32 1.442695, %v481_v59 }
 0x3cf   :  { %v515_v57 = vpop.permute.xlu1 %514 }
 0x3d0   :  { %v488_v60 = vmul.f32 1.442695, %v482_v56  ;;  %1399 = vmatprep.subr.bf16.mxu1 %v515_v57 }
 0x3d1   :  { %v479_v61 = vpop.xlane.xlu0 %478  ;;  %1400 = vmatpush3.bf16.msra.mxu1 %v515_v57 }
 0x3d2   :  { %1534 = vpow2.f32 %v488_v60  ;;  %v483_v62 = vsub.f32 %v466_v50, %v479_v61 }
 0x3d3   :  { %1536 = vpow2.f32 %v484_v58 }
 0x3d4   :  { %v490_v0 = vmul.f32 1.442695, %v483_v62 }
 0x3d6   :  { %1538 = vpow2.f32 %v490_v0 }
 0x3d7   :  { %1540 = vpow2.f32 %v486_v63 }
 0x3dc   :  { %v1535_v1 = vpop.eup %1534 }
 0x3dd   :  { %v498_v2 = vsel %vm467_vm4, %v1535_v1, 0.0  ;;  %v1537_v3 = vpop.eup %1536 }
 0x3de   :  { %499 = vadd.xlane.f32.xlu1 %v498_v2  ;;  %v492_v6 = vsel %vm467_vm4, %v1537_v3, 0.0 }
 0x3e0   :  { %v1539_v4 = vpop.eup %1538 }
 0x3e1   :  { %v501_v5 = vsel %vm467_vm4, %v1539_v4, 0.0  ;;  %v1541_v7 = vpop.eup %1540 }
 0x3e2   :  { %502 = vadd.xlane.f32.xlu0 %v501_v5  ;;  %493 = vadd.xlane.f32.xlu1 %v492_v6  ;;  %v495_v8 = vsel %vm467_vm4, %v1541_v7, 0.0 }
 0x3e6   :  { %496 = vadd.xlane.f32.xlu0 %v495_v8  ;;  %v309_v8 = vld [vmem:[#allocation9 + $0x20] sm:$0xff] }
 0x3f3   :  { %1488 = vrot.lane.b32.xlu1 %v1487_v15, %s1776_s0 }
 0x3fc   :  { %596 = vrot.lane.b32.xlu0 %v1941_v16, %s1772_s4 }
 0x46b   :  { %v500_v9 = vpop.xlane.xlu1 %499 }
 0x46f   :  { %v503_v11 = vpop.xlane.xlu0 %502  ;;  %v494_v13 = vpop.xlane.xlu1 %493 }
 0x470   :  { %1542 = vrcp.f32 %v503_v11 }
 0x471   :  { %1544 = vrcp.f32 %v494_v13 }
 0x472   :  { %1546 = vrcp.f32 %v500_v9  ;;  %v310_v9 = vld [vmem:[#allocation9 + $0x28] sm:$0xff] }
 0x473   :  { %v497_v14 = vpop.xlane.xlu0 %496  ;;  %v1489_v31 = vpop.permute.xlu1 %1488 }
 0x474   :  { %1548 = vrcp.f32 %v497_v14  ;;  %v1491_v33 = vunpack.i.h.bf16 %v1489_v31  ;;  %v1490_v34 = vunpack.i.l.bf16 %v1489_v31 }
 0x476   :  { %v594_v35 = vpack.c.bf16 %v1491_v33, %v1490_v34  ;;  %v358_v33 = vld [vmem:[#allocation11 + $0x20] sm:$0xff]  ;;  %v359_v34 = vld [vmem:[#allocation11 + $0x28] sm:$0xff] }
 0x477   :  { %v597_v21 = vpop.permute.xlu0 %596 }
 0x478   :  { %1462 = vmatprep.subr.msk.bf16.mxu1 %vm404_vm2, %v597_v21  ;;  %v605_v32 = vsel %vm404_vm2, %v597_v21, 0  ;;  %v266_v21 = vld [vmem:[#allocation8 + $0x20] sm:$0xff] }
 0x47a   :  { %v1543_v22 = vpop.eup %1542 }
 0x47b   :  { %v1545_v23 = vpop.eup %1544  ;;  %v511_v10 = vmul.f32 %v1543_v22, %v1539_v4  ;;  %v311_v22 = vld [vmem:[#allocation9 + $0x30] sm:$0xff] }
 0x47c   :  { %v1547_v24 = vpop.eup %1546  ;;  %v508_v12 = vmul.f32 %v1545_v23, %v1537_v3  ;;  %v312_v23 = vld [vmem:[#allocation9 + $0x38] sm:$0xff] }
 0x47d   :  { %v510_v26 = vmul.f32 %v1547_v24, %v1535_v1 }
 0x47e   :  { %v1549_v25 = vpop.eup %1548 }
 0x47f   :  { %v509_v15 = vmul.f32 %v1549_v25, %v1541_v7  ;;  %v513_v30 = vpack.c.bf16 %v511_v10, %v510_v26 }
 0x481   :  { %v512_v29 = vpack.c.bf16 %v509_v15, %v508_v12  ;;  %v267_v12 = vld [vmem:[#allocation8 + $0x28] sm:$0xff]  ;;  %v268_v15 = vld [vmem:[#allocation8 + $0x30] sm:$0xff] }
 0x483   :  { %1401 = vmatprep.mubr.msk.bf16.mxu1 %vm467_vm4, %v512_v29 }
 0x484   :  { %1402 = vmatmul.mubr.msk.bf16.vlgmr.msra.gmra.mrb[0].mxu1 %vm467_vm4, %v513_v30  ;;  %v269_v30 = vld [vmem:[#allocation8 + $0x38] sm:$0xff] }
 0x485   :  { %1406 = vmatpush3.bf16.xpose.msra.mxu1 %v605_v32  ;;  %1407 = vmatprep.mubr.msk.bf16.mxu1 %vm404_vm2, %v1941_v16 }
 0x48c   :  { %1408 = vmatmul.mubr.msk.bf16.vlgmr.msra.gmra.mrb[4].mxu1 %vm404_vm2, %v594_v35  ;;  %v274_v35 = vmul.f32 %v266_v21, %v1946_v17 }
 0x557   :  { %v2008_v37 = vpop.f32.mrb[0].mxu1 }
 0x558   :  { %v557_v39 = vpop.f32.mrb[1].mxu1 }
 0x559   :  { %572 = vst.msk [vmem:[#allocation2] sm:$0xff] %vm404_vm2, %v557_v39  ;;  %v2011_v27 = vpop.f32.mrb[2].mxu1 }
 0x55a   :  { %v560_v41 = vpop.f32.mrb[3].mxu1 }
 0x55b   :  { %573 = vst.msk [vmem:[#allocation2 + $0x8] sm:$0xff] %vm404_vm2, %v560_v41 }
 0x55f   :  { %v1409_v42 = vpop.f32.mrb[4].mxu1 }
 0x560   :  { %v641_v43 = vpop.f32.mrb[5].mxu1  ;;  %v658_v52 = vsel %vm1964_vm5, %v1409_v42, -1e+30 }
 0x561   :  { %v656_v44 = vsel %vm1959_vm3, %v641_v43, -1e+30  ;;  %v1410_v45 = vpop.f32.mrb[6].mxu1  ;;  %v666_v54 = vsel %vm467_vm4, %v658_v52, -inf }
 0x562   :  { %v644_v46 = vpop.f32.mrb[7].mxu1  ;;  %v660_v48 = vsel %vm467_vm4, %v656_v44, -inf  ;;  %v659_v49 = vsel %vm1981_vm7, %v1410_v45, -1e+30  ;;  %v275_v45 = vmul.f32 %v267_v12, %v1948_v18 }
 0x563   :  { %v657_v50 = vsel %vm1969_vm6, %v644_v46, -1e+30  ;;  %661 = vmax.xlane.f32.xlu1 %v660_v48  ;;  %v669_v53 = vsel %vm467_vm4, %v659_v49, -inf  ;;  %v276_v46 = vmul.f32 %v268_v15, %v1950_v19 }
 0x564   :  { %v663_v51 = vsel %vm467_vm4, %v657_v50, -inf }
 0x565   :  { %664 = vmax.xlane.f32.xlu0 %v663_v51  ;;  %v361_v51 = vld [vmem:[#allocation11 + $0x38] sm:$0xff] }
 0x567   :  { %670 = vmax.xlane.f32.xlu1 %v669_v53 }
 0x569   :  { %667 = vmax.xlane.f32.xlu0 %v666_v54 }
 0x578   :  { %284 = vrot.lane.b32.xlu1 %v1950_v19, %s1773_s22 }
 0x57c   :  { %290 = vrot.lane.b32.xlu1 %v1948_v18, %s1773_s22 }
 0x57f   :  { %282 = vrot.lane.b32.xlu0 %v1946_v17, %s1773_s22 }
 0x580   :  { %333 = vrot.lane.b32.xlu1 %v1946_v17, %s1775_s5 }
 0x583   :  { %292 = vrot.lane.b32.xlu0 %v1952_v20, %s1773_s22 }
 0x584   :  { %341 = vrot.lane.b32.xlu1 %v1948_v18, %s1775_s5 }
 0x587   :  { %335 = vrot.lane.b32.xlu0 %v1950_v19, %s1775_s5 }
 0x58b   :  { %343 = vrot.lane.b32.xlu0 %v1952_v20, %s1775_s5 }
 0x5f0   :  { %v662_v55 = vpop.xlane.xlu1 %661 }
 0x5f1   :  { %v672_v56 = vsub.f32 %v656_v44, %v662_v55 }
 0x5f2   :  { %v665_v57 = vpop.xlane.xlu0 %664 }
 0x5f3   :  { %v676_v58 = vmul.f32 1.442695, %v672_v56  ;;  %v673_v59 = vsub.f32 %v657_v50, %v665_v57  ;;  %v360_v50 = vld [vmem:[#allocation11 + $0x30] sm:$0xff] }
 0x5f4   :  { %v671_v60 = vpop.xlane.xlu1 %670 }
 0x5f5   :  { %1550 = vpow2.f32 %v676_v58  ;;  %v675_v61 = vsub.f32 %v659_v49, %v671_v60  ;;  %v678_v1 = vmul.f32 1.442695, %v673_v59 }
 0x5f6   :  { %v668_v62 = vpop.xlane.xlu0 %667 }
 0x5f7   :  { %v682_v63 = vmul.f32 1.442695, %v675_v61  ;;  %v674_v0 = vsub.f32 %v658_v52, %v668_v62  ;;  %v277_v52 = vmul.f32 %v269_v30, %v1952_v20 }
 0x5f8   :  { %v285_v2 = vpop.permute.xlu1 %284 }
 0x5f9   :  { %1552 = vpow2.f32 %v682_v63  ;;  %v680_v3 = vmul.f32 1.442695, %v674_v0 }
 0x5fa   :  { %v283_v4 = vpop.permute.xlu0 %282 }
 0x5fb   :  { %1554 = vpow2.f32 %v680_v3 }
 0x5fc   :  { %1556 = vpow2.f32 %v678_v1  ;;  %v291_v5 = vpop.permute.xlu1 %290 }
 0x5fd   :  { %v299_v11 = vsel %vm296_vm0, %v283_v4, %v291_v5  ;;  %v303_v13 = vsel %vm296_vm0, %v291_v5, %v283_v4 }
 0x5fe   :  { %v293_v6 = vpop.permute.xlu0 %292  ;;  %v317_v31 = vmul.f32 %v309_v8, %v303_v13  ;;  %v318_v32 = vmul.f32 %v310_v9, %v299_v11 }
 0x5ff   :  { %v2042_v7 = vpop.eup %1550  ;;  %v300_v24 = vsel %vm296_vm0, %v285_v2, %v293_v6  ;;  %v304_v25 = vsel %vm296_vm0, %v293_v6, %v285_v2 }
 0x600   :  { %v334_v14 = vpop.permute.xlu1 %333  ;;  %v684_v10 = vsel %vm467_vm4, %v2042_v7, 0.0  ;;  %v319_v39 = vmul.f32 %v311_v22, %v304_v25  ;;  %v320_v41 = vmul.f32 %v312_v23, %v300_v24  ;;  %v325_v18 = vadd.f32 %v317_v31, %v274_v35 }
 0x601   :  { %685 = vadd.xlane.f32.xlu1 %v684_v10  ;;  %v326_v57 = vadd.f32 %v318_v32, %v275_v45 }
 0x602   :  { %v336_v26 = vpop.permute.xlu0 %335  ;;  %v327_v59 = vadd.f32 %v319_v39, %v276_v46  ;;  %v328_v60 = vadd.f32 %v320_v41, %v277_v52 }
 0x603   :  { %v2054_v29 = vpop.eup %1552 }
 0x604   :  { %v342_v42 = vpop.permute.xlu1 %341  ;;  %v693_v43 = vsel %vm467_vm4, %v2054_v29, 0.0 }
 0x605   :  { %v1555_v44 = vpop.eup %1554  ;;  %v348_v48 = vsel %vm345_vm1, %v334_v14, %v342_v42  ;;  %v352_v49 = vsel %vm345_vm1, %v342_v42, %v334_v14  ;;  %694 = vadd.xlane.f32.xlu1 %v693_v43 }
 0x606   :  { %v1557_v17 = vpop.eup %1556  ;;  %v366_v53 = vmul.f32 %v358_v33, %v348_v48  ;;  %v367_v54 = vmul.f32 %v359_v34, %v352_v49  ;;  %v344_v55 = vpop.permute.xlu0 %343  ;;  %v690_v56 = vsel %vm467_vm4, %v1555_v44, 0.0 }
 0x607   :  { %v349_v19 = vsel %vm345_vm1, %v336_v26, %v344_v55  ;;  %v353_v58 = vsel %vm345_vm1, %v344_v55, %v336_v26  ;;  %691 = vadd.xlane.f32.xlu0 %v690_v56  ;;  %v687_v20 = vsel %vm467_vm4, %v1557_v17, 0.0 }
 0x608   :  { %v368_v61 = vmul.f32 %v360_v50, %v349_v19  ;;  %v369_v62 = vmul.f32 %v361_v51, %v353_v58  ;;  %v374_v63 = vadd.f32 %v366_v53, %v325_v18  ;;  %v375_v0 = vadd.f32 %v367_v54, %v326_v57 }
 0x60a   :  { %v376_v1 = vadd.f32 %v368_v61, %v327_v59  ;;  %v377_v2 = vadd.f32 %v369_v62, %v328_v60 }
 0x60b   :  { %688 = vadd.xlane.f32.xlu0 %v687_v20 }
 0x60c   :  { %v2072_v3 = vpack.c.bf16 %v376_v1, %v374_v63  ;;  %v1492_v4 = vpack.i.bf16 %v376_v1, %v374_v63  ;;  %v1497_v5 = vpack.i.bf16 %v377_v2, %v375_v0  ;;  %v2074_v6 = vpack.c.bf16 %v377_v2, %v375_v0 }
 0x616   :  { %797 = vrot.lane.b32.xlu1 %v2072_v3, %s1772_s4 }
 0x61a   :  { %1493 = vrot.lane.b32.xlu1 %v1492_v4, %s1776_s0 }
 0x61e   :  { %1498 = vrot.lane.b32.xlu1 %v1497_v5, %s1776_s0 }
 0x621   :  { %706 = vrot.lane.b32.xlu0 %v1941_v16, %s1777_s14 }
 0x625   :  { %988 = vrot.lane.b32.xlu0 %v2074_v6, %s1772_s4 }
 0x68e   :  { %v686_v28 = vpop.xlane.xlu1 %685 }
 0x692   :  { %v695_v9 = vpop.xlane.xlu1 %694 }
 0x694   :  { %v692_v8 = vpop.xlane.xlu0 %691 }
 0x695   :  { %1558 = vrcp.f32 %v692_v8 }
 0x696   :  { %1560 = vrcp.f32 %v686_v28  ;;  %v798_v14 = vpop.permute.xlu1 %797 }
 0x697   :  { %1562 = vrcp.f32 %v695_v9  ;;  %v806_v31 = vsel %vm404_vm2, %v798_v14, 0 }
 0x698   :  { %v689_v11 = vpop.xlane.xlu0 %688 }
 0x699   :  { %1564 = vrcp.f32 %v689_v11 }
 0x69a   :  { %v1494_v30 = vpop.permute.xlu1 %1493 }
 0x69b   :  { %v1496_v33 = vunpack.i.h.bf16 %v1494_v30  ;;  %v1495_v34 = vunpack.i.l.bf16 %v1494_v30 }
 0x69c   :  { %v707_v13 = vpop.permute.xlu0 %706 }
 0x69d   :  { %1411 = vmatprep.subr.bf16.mxu1 %v707_v13 }
 0x69e   :  { %1412 = vmatpush3.bf16.msra.mxu1 %v707_v13 }
 0x69f   :  { %1463 = vmatprep.subr.msk.bf16.mxu1 %vm404_vm2, %v798_v14  ;;  %v1559_v21 = vpop.eup %1558 }
 0x6a0   :  { %v1561_v22 = vpop.eup %1560  ;;  %v702_v24 = vmul.f32 %v1559_v21, %v1555_v44  ;;  %v989_v32 = vpop.permute.xlu0 %988 }
 0x6a1   :  { %v1563_v16 = vpop.eup %1562  ;;  %v700_v25 = vmul.f32 %v1561_v22, %v2042_v7  ;;  %v795_v7 = vpack.c.bf16 %v1496_v33, %v1495_v34  ;;  %v997_v35 = vsel %vm404_vm2, %v989_v32, 0 }
 0x6a2   :  { %v703_v12 = vmul.f32 %v1563_v16, %v2054_v29  ;;  %v1499_v29 = vpop.permute.xlu1 %1498 }
 0x6a3   :  { %v1565_v23 = vpop.eup %1564  ;;  %v1501_v39 = vunpack.i.h.bf16 %v1499_v29  ;;  %v1500_v41 = vunpack.i.l.bf16 %v1499_v29 }
 0x6a4   :  { %v701_v10 = vmul.f32 %v1565_v23, %v1557_v17  ;;  %v705_v26 = vpack.c.bf16 %v703_v12, %v702_v24 }
 0x6a5   :  { %v986_v42 = vpack.c.bf16 %v1501_v39, %v1500_v41 }
 0x6a6   :  { %v704_v15 = vpack.c.bf16 %v701_v10, %v700_v25 }
 0x6a8   :  { %1413 = vmatprep.mubr.msk.bf16.mxu1 %vm467_vm4, %v704_v15 }
 0x6a9   :  { %1414 = vmatmul.mubr.msk.bf16.vlgmr.msra.gmra.mrb[8].mxu1 %vm467_vm4, %v705_v26 }
 0x6aa   :  { %1418 = vmatpush3.bf16.xpose.msra.mxu1 %v806_v31  ;;  %1419 = vmatprep.mubr.msk.bf16.mxu1 %vm404_vm2, %v2072_v3 }
 0x6ab   :  { %1464 = vmatprep.subr.msk.bf16.mxu1 %vm404_vm2, %v989_v32 }
 0x6b1   :  { %1420 = vmatmul.mubr.msk.bf16.vlgmr.msra.gmra.mrb[12].mxu1 %vm404_vm2, %v795_v7 }
 0x6b2   :  { %1430 = vmatpush3.bf16.xpose.msra.mxu1 %v997_v35  ;;  %1431 = vmatprep.mubr.msk.bf16.mxu1 %vm404_vm2, %v2074_v6 }
 0x6b9   :  { %1432 = vmatmul.mubr.msk.bf16.vlgmr.msra.gmra.mrb[16].mxu1 %vm404_vm2, %v986_v42 }
 0x77c   :  { %v2098_v43 = vpop.f32.mrb[8].mxu1 }
 0x77d   :  { %v2100_v44 = vpop.f32.mrb[9].mxu1 }
 0x77e   :  { %v2102_v45 = vpop.f32.mrb[10].mxu1 }
 0x77f   :  { %v2104_v46 = vpop.f32.mrb[11].mxu1 }
 0x784   :  { %v1421_v48 = vpop.f32.mrb[12].mxu1 }
 0x785   :  { %v842_v49 = vpop.f32.mrb[13].mxu1  ;;  %v859_v53 = vsel %vm1964_vm5, %v1421_v48, -1e+30 }
 0x786   :  { %v857_v50 = vsel %vm1959_vm3, %v842_v49, -1e+30  ;;  %v1422_v51 = vpop.f32.mrb[14].mxu1  ;;  %v867_v56 = vsel %vm467_vm4, %v859_v53, -inf }
 0x787   :  { %v845_v17 = vpop.f32.mrb[15].mxu1  ;;  %v861_v52 = vsel %vm467_vm4, %v857_v50, -inf  ;;  %v860_v18 = vsel %vm1981_vm7, %v1422_v51, -1e+30 }
 0x788   :  { %v858_v54 = vsel %vm1969_vm6, %v845_v17, -1e+30  ;;  %862 = vmax.xlane.f32.xlu0 %v861_v52  ;;  %v870_v61 = vsel %vm467_vm4, %v860_v18, -inf }
 0x789   :  { %v864_v55 = vsel %vm467_vm4, %v858_v54, -inf }
 0x78a   :  { %865 = vmax.xlane.f32.xlu1 %v864_v55 }
 0x78c   :  { %868 = vmax.xlane.f32.xlu0 %v867_v56  ;;  %v1433_v57 = vpop.f32.mrb[16].mxu1 }
 0x78d   :  { %v1033_v19 = vpop.f32.mrb[17].mxu1  ;;  %v1050_v20 = vsel %vm1964_vm5, %v1433_v57, -1e+30 }
 0x78e   :  { %v1048_v58 = vsel %vm1959_vm3, %v1033_v19, -1e+30  ;;  %v1434_v59 = vpop.f32.mrb[18].mxu1  ;;  %v1058_v0 = vsel %vm467_vm4, %v1050_v20, -inf }
 0x78f   :  { %v1036_v60 = vpop.f32.mrb[19].mxu1  ;;  %v1052_v62 = vsel %vm467_vm4, %v1048_v58, -inf  ;;  %v1051_v36 = vsel %vm1981_vm7, %v1434_v59, -1e+30 }
 0x790   :  { %v1049_v63 = vsel %vm1969_vm6, %v1036_v60, -1e+30  ;;  %871 = vmax.xlane.f32.xlu0 %v870_v61  ;;  %1053 = vmax.xlane.f32.xlu1 %v1052_v62  ;;  %v1061_v2 = vsel %vm467_vm4, %v1051_v36, -inf }
 0x791   :  { %v1055_v1 = vsel %vm467_vm4, %v1049_v63, -inf }
 0x794   :  { %1059 = vmax.xlane.f32.xlu1 %v1058_v0  ;;  %1056 = vmax.xlane.f32.xlu0 %v1055_v1 }
 0x798   :  { %1062 = vmax.xlane.f32.xlu0 %v1061_v2 }
 0x815   :  { %v863_v4 = vpop.xlane.xlu0 %862 }
 0x816   :  { %v873_v38 = vsub.f32 %v857_v50, %v863_v4 }
 0x817   :  { %v866_v5 = vpop.xlane.xlu1 %865 }
 0x818   :  { %v877_v8 = vmul.f32 1.442695, %v873_v38  ;;  %v874_v9 = vsub.f32 %v858_v54, %v866_v5 }
 0x819   :  { %v869_v28 = vpop.xlane.xlu0 %868 }
 0x81a   :  { %v875_v40 = vsub.f32 %v859_v53, %v869_v28  ;;  %v879_v47 = vmul.f32 1.442695, %v874_v9 }
 0x81c   :  { %v881_v11 = vmul.f32 1.442695, %v875_v40 }
 0x81d   :  { %v872_v13 = vpop.xlane.xlu0 %871  ;;  %v1054_v14 = vpop.xlane.xlu1 %1053 }
 0x81e   :  { %1566 = vpow2.f32 %v881_v11  ;;  %v876_v21 = vsub.f32 %v860_v18, %v872_v13  ;;  %v1064_v16 = vsub.f32 %v1048_v58, %v1054_v14 }
 0x81f   :  { %1568 = vpow2.f32 %v877_v8 }
 0x820   :  { %v883_v22 = vmul.f32 1.442695, %v876_v21  ;;  %v1068_v10 = vmul.f32 1.442695, %v1064_v16 }
 0x821   :  { %v1060_v23 = vpop.xlane.xlu1 %1059  ;;  %v1057_v24 = vpop.xlane.xlu0 %1056 }
 0x822   :  { %1570 = vpow2.f32 %v883_v22  ;;  %v1066_v25 = vsub.f32 %v1050_v20, %v1060_v23  ;;  %v1065_v15 = vsub.f32 %v1049_v63, %v1057_v24  ;;  %v1526_v24 = vld [vmem:[#allocation12] sm:$0xff]  }
 0x823   :  { %1572 = vpow2.f32 %v879_v47  ;;  %1441 = vmatprep.subr.bf16.mxu1 %v1526_v24 }
 0x824   :  { %v1072_v12 = vmul.f32 1.442695, %v1066_v25  ;;  %v1070_v32 = vmul.f32 1.442695, %v1065_v15  ;;  %v1527_v25 = vld [vmem:[#allocation12 + $0x8] sm:$0xff]   ;;  %1442 = vmatpush3.bf16.msra.mxu1 %v1526_v24  ;;  %v1530_v15 = vld [vmem:[#allocation12 + $0x20] sm:$0xff]  }
 0x825   :  { %v1063_v26 = vpop.xlane.xlu0 %1062  ;;  %1443 = vmatprep.subr.bf16.mxu1 %v1527_v25 }
 0x826   :  { %1574 = vpow2.f32 %v1072_v12  ;;  %v1067_v30 = vsub.f32 %v1051_v36, %v1063_v26  ;;  %v1529_v12 = vld [vmem:[#allocation12 + $0x18] sm:$0xff]  }
 0x827   :  { %1576 = vpow2.f32 %v1068_v10  ;;  %v1528_v10 = vld [vmem:[#allocation12 + $0x10] sm:$0xff]  }
 0x828   :  { %v2130_v31 = vpop.eup %1566  ;;  %v1074_v33 = vmul.f32 1.442695, %v1067_v30  ;;  %1444 = vmatpush3.bf16.msra.mxu1 %v1527_v25  ;;  %v1531_v30 = vld [vmem:[#allocation12 + $0x28] sm:$0xff]  }
 0x829   :  { %v891_v34 = vsel %vm467_vm4, %v2130_v31, 0.0  ;;  %v1569_v7 = vpop.eup %1568  ;;  %1445 = vmatprep.subr.bf16.mxu1 %v1528_v10 }
 0x82a   :  { %1578 = vpow2.f32 %v1074_v33  ;;  %892 = vadd.xlane.f32.xlu1 %v891_v34  ;;  %v885_v35 = vsel %vm467_vm4, %v1569_v7, 0.0  ;;  %v1532_v34 = vld [vmem:[#allocation12 + $0x30] sm:$0xff]  }
 0x82b   :  { %1580 = vpow2.f32 %v1070_v32 }
 0x82c   :  { %v1571_v29 = vpop.eup %1570  ;;  %1446 = vmatpush3.bf16.msra.mxu1 %v1528_v10 }
 0x82d   :  { %v894_v39 = vsel %vm467_vm4, %v1571_v29, 0.0  ;;  %v1573_v41 = vpop.eup %1572  ;;  %1447 = vmatprep.subr.bf16.mxu1 %v1529_v12 }
 0x82e   :  { %886 = vadd.xlane.f32.xlu1 %v885_v35  ;;  %895 = vadd.xlane.f32.xlu0 %v894_v39  ;;  %v888_v49 = vsel %vm467_vm4, %v1573_v41, 0.0 }
 0x830   :  { %v2136_v42 = vpop.eup %1574  ;;  %1448 = vmatpush3.bf16.msra.mxu1 %v1529_v12 }
 0x831   :  { %v1082_v48 = vsel %vm467_vm4, %v2136_v42, 0.0  ;;  %v2141_v50 = vpop.eup %1576  ;;  %1449 = vmatprep.subr.bf16.mxu1 %v1530_v15 }
 0x832   :  { %1083 = vadd.xlane.f32.xlu1 %v1082_v48  ;;  %889 = vadd.xlane.f32.xlu0 %v888_v49  ;;  %v1076_v17 = vsel %vm467_vm4, %v2141_v50, 0.0 }
 0x834   :  { %v2143_v51 = vpop.eup %1578  ;;  %1450 = vmatpush3.bf16.msra.mxu1 %v1530_v15 }
 0x835   :  { %v1085_v52 = vsel %vm467_vm4, %v2143_v51, 0.0  ;;  %v2149_v53 = vpop.eup %1580  ;;  %1451 = vmatprep.subr.bf16.mxu1 %v1531_v30 }
 0x836   :  { %1077 = vadd.xlane.f32.xlu1 %v1076_v17  ;;  %1086 = vadd.xlane.f32.xlu0 %v1085_v52  ;;  %v1079_v54 = vsel %vm467_vm4, %v2149_v53, 0.0 }
 0x838   :  { %1452 = vmatpush3.bf16.msra.mxu1 %v1531_v30 }
 0x839   :  { %1453 = vmatprep.subr.bf16.mxu1 %v1532_v34 }
 0x83a   :  { %1080 = vadd.xlane.f32.xlu0 %v1079_v54 }
 0x83c   :  { %1454 = vmatpush3.bf16.msra.mxu1 %v1532_v34 }
 0x847   :  { %907 = vrot.lane.b32.xlu1 %v2072_v3, %s1777_s14 }
 0x84b   :  { %576 = vrot.lane.b32.xlu1 %v2008_v37, %s1777_s14 }
 0x84f   :  { %578 = vrot.lane.b32.xlu1 %v2011_v27, %s1777_s14 }
 0x850   :  { %1098 = vrot.lane.b32.xlu0 %v2074_v6, %s1777_s14 }
 0x853   :  { %768 = vrot.lane.b32.xlu1 %v2104_v46, %s1772_s4 }
 0x854   :  { %766 = vrot.lane.b32.xlu0 %v2100_v44, %s1772_s4 }
 0x857   :  { %779 = vrot.lane.b32.xlu1 %v2102_v45, %s1776_s0 }
 0x858   :  { %777 = vrot.lane.b32.xlu0 %v2098_v43, %s1776_s0 }
 0x8b7   :  { %v893_v3 = vpop.xlane.xlu1 %892 }
 0x8bb   :  { %v887_v37 = vpop.xlane.xlu1 %886  ;;  %v896_v55 = vpop.xlane.xlu0 %895 }
 0x8bc   :  { %1582 = vrcp.f32 %v896_v55 }
 0x8bd   :  { %1584 = vrcp.f32 %v887_v37 }
 0x8be   :  { %1586 = vrcp.f32 %v893_v3 }
 0x8bf   :  { %v1084_v27 = vpop.xlane.xlu1 %1083  ;;  %v890_v56 = vpop.xlane.xlu0 %889 }
 0x8c0   :  { %1588 = vrcp.f32 %v890_v56 }
 0x8c3   :  { %v1078_v6 = vpop.xlane.xlu1 %1077  ;;  %v1087_v46 = vpop.xlane.xlu0 %1086 }
 0x8c4   :  { %1590 = vrcp.f32 %v1078_v6 }
 0x8c5   :  { %1592 = vrcp.f32 %v1087_v46 }
 0x8c6   :  { %1594 = vrcp.f32 %v1084_v27  ;;  %v1583_v45 = vpop.eup %1582 }
 0x8c7   :  { %v908_v44 = vpop.permute.xlu1 %907  ;;  %v1081_v18 = vpop.xlane.xlu0 %1080  ;;  %v904_v58 = vmul.f32 %v1583_v45, %v1571_v29 }
 0x8c8   :  { %1596 = vrcp.f32 %v1081_v18  ;;  %1423 = vmatprep.subr.bf16.mxu0 %v908_v44  ;;  %v1585_v43 = vpop.eup %1584 }
 0x8c9   :  { %1424 = vmatpush3.bf16.msra.mxu0 %v908_v44  ;;  %v1587_v57 = vpop.eup %1586  ;;  %v901_v61 = vmul.f32 %v1585_v43, %v1569_v7  ;;  %v1533_v7 = vld [vmem:[#allocation12 + $0x38] sm:$0xff]  }
 0x8ca   :  { %v1589_v19 = vpop.eup %1588  ;;  %v903_v20 = vmul.f32 %v1587_v57, %v2130_v31  ;;  %1455 = vmatprep.subr.bf16.mxu1 %v1533_v7 }
 0x8cb   :  { %v577_v59 = vpop.permute.xlu1 %576  ;;  %v1099_v60 = vpop.permute.xlu0 %1098  ;;  %v902_v62 = vmul.f32 %v1589_v19, %v1573_v41  ;;  %1456 = vmatpush3.bf16.msra.mxu1 %v1533_v7 }
 0x8cc   :  { %583 = vst.msk [vmem:[#allocation2] sm:$0xff] %vm582_vm8, %v577_v59  ;;  %1435 = vmatprep.subr.bf16.mxu0 %v1099_v60  ;;  %v906_v2 = vpack.c.bf16 %v904_v58, %v903_v20 }
 0x8cd   :  { %v905_v63 = vpack.c.bf16 %v902_v62, %v901_v61 }
 0x8ce   :  { %v1591_v0 = vpop.eup %1590 }
 0x8cf   :  { %v579_v1 = vpop.permute.xlu1 %578  ;;  %v767_v36 = vpop.permute.xlu0 %766  ;;  %1425 = vmatprep.mubr.msk.bf16.mxu0 %vm467_vm4, %v905_v63  ;;  %v1092_v9 = vmul.f32 %v1591_v0, %v2141_v50 }
 0x8d0   :  { %v1593_v4 = vpop.eup %1592  ;;  %584 = vst.msk [vmem:[#allocation2 + $0x8] sm:$0xff] %vm582_vm8, %v579_v1  ;;  %1426 = vmatmul.mubr.msk.bf16.vlgmr.msra.gmra.mrb[12].mxu0 %vm467_vm4, %v906_v2 }
 0x8d1   :  { %773 = vst.msk [vmem:[#allocation2] sm:$0xff] %vm772_vm9, %v767_v36  ;;  %v1595_v38 = vpop.eup %1594  ;;  %1436 = vmatpush3.bf16.msra.mxu0 %v1099_v60  ;;  %v1095_v28 = vmul.f32 %v1593_v4, %v2143_v51 }
 0x8d2   :  { %v1597_v5 = vpop.eup %1596  ;;  %v1094_v13 = vmul.f32 %v1595_v38, %v2136_v42 }
 0x8d3   :  { %v769_v40 = vpop.permute.xlu1 %768  ;;  %v778_v8 = vpop.permute.xlu0 %777  ;;  %v1093_v11 = vmul.f32 %v1597_v5, %v2149_v53 }
 0x8d4   :  { %774 = vst.msk [vmem:[#allocation2 + $0x8] sm:$0xff] %vm772_vm9, %v769_v40  ;;  %v1097_v47 = vpack.c.bf16 %v1095_v28, %v1094_v13 }
 0x8d5   :  { %784 = vst.msk [vmem:[#allocation2] sm:$0xff] %vm783_vm10, %v778_v8  ;;  %v1096_v14 = vpack.c.bf16 %v1093_v11, %v1092_v9 }
 0x8d7   :  { %v780_v21 = vpop.permute.xlu1 %779  ;;  %1437 = vmatprep.mubr.msk.bf16.mxu0 %vm467_vm4, %v1096_v14 }
 0x8d8   :  { %785 = vst.msk [vmem:[#allocation2 + $0x8] sm:$0xff] %vm783_vm10, %v780_v21  ;;  %1438 = vmatmul.mubr.msk.bf16.vlgmr.msra.gmra.mrb[16].mxu0 %vm467_vm4, %v1097_v47 }
 0x8dc   :  { %v1176_v22 = vld [vmem:[#allocation2] sm:$0xff] }
 0x8df   :  { %v1177_v16 = vld [vmem:[#allocation2 + $0x8] sm:$0xff] }
 0x8e0   :  { %v1180_v23 = vpack.c.bf16 %v1177_v16, %v1176_v22 }
 0x8e2   :  { %1457 = vmatprep.mubr.bf16.mxu1 %v1180_v23 }
 0x9a3   :  { %v1427_v26 = vpop.f32.mrb[12].mxu0 }
 0x9a4   :  { %969 = vrot.lane.b32.xlu0 %v1427_v26, %s1777_s14  ;;  %v950_v31 = vpop.f32.mrb[13].mxu0 }
 0x9a5   :  { %965 = vst.msk [vmem:[#allocation2 + $0x10] sm:$0xff] %vm404_vm2, %v950_v31  ;;  %v1428_v32 = vpop.f32.mrb[14].mxu0 }
 0x9a6   :  { %971 = vrot.lane.b32.xlu1 %v1428_v32, %s1777_s14  ;;  %v953_v33 = vpop.f32.mrb[15].mxu0 }
 0x9a7   :  { %966 = vst.msk [vmem:[#allocation2 + $0x18] sm:$0xff] %vm404_vm2, %v953_v33 }
 0x9ab   :  { %v1439_v29 = vpop.f32.mrb[16].mxu0 }
 0x9ac   :  { %v1141_v35 = vpop.f32.mrb[17].mxu0 }
 0x9ad   :  { %1158 = vrot.lane.b32.xlu0 %v1141_v35, %s1772_s4  ;;  %v1440_v39 = vpop.f32.mrb[18].mxu0 }
 0x9ae   :  { %v1144_v41 = vpop.f32.mrb[19].mxu0 }
 0x9af   :  { %1160 = vrot.lane.b32.xlu1 %v1144_v41, %s1772_s4 }
 0x9b1   :  { %1168 = vrot.lane.b32.xlu0 %v1439_v29, %s1776_s0 }
 0x9b3   :  { %1170 = vrot.lane.b32.xlu1 %v1440_v39, %s1776_s0 }
 0xa16   :  { %v970_v42 = vpop.permute.xlu0 %969 }
 0xa17   :  { %975 = vst.msk [vmem:[#allocation2 + $0x10] sm:$0xff] %vm582_vm8, %v970_v42 }
 0xa18   :  { %v972_v48 = vpop.permute.xlu1 %971 }
 0xa19   :  { %976 = vst.msk [vmem:[#allocation2 + $0x18] sm:$0xff] %vm582_vm8, %v972_v48 }
 0xa1f   :  { %v1159_v49 = vpop.permute.xlu0 %1158 }
 0xa20   :  { %1164 = vst.msk [vmem:[#allocation2 + $0x10] sm:$0xff] %vm772_vm9, %v1159_v49 }
 0xa21   :  { %v1161_v50 = vpop.permute.xlu1 %1160 }
 0xa22   :  { %1165 = vst.msk [vmem:[#allocation2 + $0x18] sm:$0xff] %vm772_vm9, %v1161_v50 }
 0xa23   :  { %v1169_v51 = vpop.permute.xlu0 %1168 }
 0xa24   :  { %1174 = vst.msk [vmem:[#allocation2 + $0x10] sm:$0xff] %vm783_vm10, %v1169_v51 }
 0xa25   :  { %v1171_v17 = vpop.permute.xlu1 %1170 }
 0xa26   :  { %1175 = vst.msk [vmem:[#allocation2 + $0x18] sm:$0xff] %vm783_vm10, %v1171_v17 }
 0xa2b   :  { %v1178_v52 = vld [vmem:[#allocation2 + $0x10] sm:$0xff] }
 0xa2d   :  { %v1179_v53 = vld [vmem:[#allocation2 + $0x18] sm:$0xff] }
 0xa2e   :  { %v1181_v54 = vpack.c.bf16 %v1179_v53, %v1178_v52 }
 0xa30   :  { %1458 = vmatmul.mubr.bf16.vlgmr.msra.gmra.mrb[20].mxu1 %v1181_v54 }
 0xb03   :  { %v1459_v3 = vpop.f32.mrb[20].mxu1 }
 0xb04   :  { %1297 = vst [vmem:[#allocation14 + $0x10] sm:$0xff] %v1459_v3  ;;  %v1280_v37 = vpop.f32.mrb[21].mxu1 }
 0xb05   :  { %1295 = vst [vmem:[#allocation14] sm:$0xff] %v1280_v37  ;;  %v1460_v55 = vpop.f32.mrb[22].mxu1 }
 0xb06   :  { %1298 = vst [vmem:[#allocation14 + $0x18] sm:$0xff] %v1460_v55  ;;  %v1283_v27 = vpop.f32.mrb[23].mxu1 }
 0xb07   :  { %1296 = vst [vmem:[#allocation14 + $0x8] sm:$0xff] %v1283_v27 }
 0xb08   :  { %1741 = shalt.err (!%p1738_p10)
}
 0xb09   :  { %s1742_s9 = scalar_lea.hbm %s2219_s6, 512 }
 0xb0a   :  { %p1743_p11 = scmp.ne.s32.totalorder %s2219_s6, %s1742_s9  ;;  %p1746_p12 = scmp.lt.u32.totalorder %s1742_s9, %s2219_s6 }
 0xb0c   :  { %p1748_p13 = pnand %p1746_p12, %p1743_p11 }
 0xb0e   :  { %1751 = shalt.err (!%p1748_p13)
}
 0xb0f   :  { %1310 = dma.vmem_to_hbm [thread:$0]  %s1305_s27, 512, %s2219_s6, [#allocation5], %s1763_s7, %s1763_s7, %s1764_s8  }
 0xb10   :  { %1760 = dma.done.wait [#allocation5], 512  }
 0xb11   :  { %1761 = vsyncadd [#allocation5], 4294966784 }
 0xb12   :  { %1314 = vsyncpa [#allocation4], 1 }
 0xb13   :  { %1315 = vsyncpa [#allocation7], 1 }
 0xb14   :  { %1316 = vsyncpa [#allocation10], 1 }
 0xb15   :  { %1317 = vsyncpa [#allocation13], 1 }
 0xb16   :  { %1318 = vsyncpa [#allocation5], 1 }

</bundles_post_ra>
